<compile_context>
chip_gen: v5e
topology: v5e:2x2
jax: 0.10.0
libtpu: 0.0.40
codegen_flags: <defaults>
</compile_context>

<pallas_src>
import functools

import numpy as np
import jax
import jax.numpy as jnp
from jax import lax
from jax.experimental import pallas as pl
from jax.experimental.pallas import tpu as pltpu
from jax.scipy.special import erf as _erf_exact  # used only by the JAX reference


# ----------------------------------------------------------------------------
# In-kernel math helpers (plain jnp/lax ops, traced inside the Pallas kernel)
# ----------------------------------------------------------------------------
def _erf_approx(z):
    # Abramowitz & Stegun 7.1.26 polynomial; max abs error ~1.5e-7.
    p = 0.3275911
    a1, a2, a3, a4, a5 = (0.254829592, -0.284496736, 1.421413741,
                          -1.453152027, 1.061405429)
    az = jnp.abs(z)
    # reciprocal on the EUP slot (frees VALU on the (S,Dff) GELU tensor)
    t = pl.reciprocal(1.0 + p * az, approx=True)
    poly = ((((a5 * t + a4) * t + a3) * t + a2) * t + a1) * t
    y = 1.0 - poly * jnp.exp(-az * az)
    return jnp.where(z >= 0.0, y, -y)


def _gelu(x):
    # HuggingFace gelu: x * 0.5 * (1 + erf(x / sqrt(2)))
    return x * 0.5 * (1.0 + _erf_approx(x * (1.0 / np.sqrt(2.0))))


def _layer_norm(x, gamma, beta, eps=1e-12):
    u = jnp.mean(x, axis=-1, keepdims=True)
    xc = x - u
    s = jnp.mean(xc * xc, axis=-1, keepdims=True)
    return gamma * (xc * lax.rsqrt(s + eps)) + beta


# ----------------------------------------------------------------------------
# Fused Transformer-block kernel (one batch element per grid step)
# ----------------------------------------------------------------------------
def block_kernel(x_ref, mask_ref,
                 wqkv_ref, bqkv_ref, wp_ref, bp_ref,
                 g1_ref, be1_ref, w1_ref, b1_ref, w2_ref, b2_ref,
                 g2_ref, be2_ref, o_ref, *, n_heads):
    # x_ref:    (S, D)        current batch element (batch dim squeezed)
    # mask_ref: (1, S)        1.0 = attend, 0.0 = masked key position
    # wqkv:     (D, 3D)       [Wq | Wk | Wv];  bqkv (1, 3D)
    # wp:       (D, D)        output projection; bp (1, D)
    # w1/w2:    (D, Dff)/(Dff, D) feed-forward; b1 (1, Dff), b2 (1, D)
    # g*/be*:   (1, D)        LayerNorm gamma/beta
    x = x_ref[...]                                   # (S, D) f32
    S, D = x.shape
    H = n_heads
    Dh = D // H
    cd = wqkv_ref.dtype                              # MXU operand dtype (bf16/f32)

    # ---- QKV: ONE full-width matmul, f32 accumulation -----------------------
    qkv = jnp.dot(x.astype(cd), wqkv_ref[...],
                  preferred_element_type=jnp.float32) + bqkv_ref[...]  # (S, 3D)

    neg = 10000.0 * (1.0 - mask_ref[...])            # (1, S) key-axis bias
    scale = 1.0 / float(np.sqrt(Dh))

    # ---- per-head attention: heads are static lane slices (no 3-D transposes)
    heads = []
    for h in range(H):
        qh = qkv[:, h * Dh:(h + 1) * Dh]                     # (S, Dh)
        kh = qkv[:, D + h * Dh:D + (h + 1) * Dh]             # (S, Dh)
        vh = qkv[:, 2 * D + h * Dh:2 * D + (h + 1) * Dh]     # (S, Dh)

        s = lax.dot_general(qh.astype(cd), kh.astype(cd),
                            (((1,), (1,)), ((), ())),
                            preferred_element_type=jnp.float32)  # (S, S)
        s = s * scale - neg
        m = jnp.max(s, axis=-1, keepdims=True)
        e = jnp.exp(s - m)
        probs = e * pl.reciprocal(jnp.sum(e, axis=-1, keepdims=True), approx=True)
        # TODO(synk): attention dropout (p_drop_attn) is identity (eval mode).
        heads.append(jnp.dot(probs.astype(cd), vh.astype(cd),
                             preferred_element_type=jnp.float32))   # (S, Dh)

    # head merge = lane concatenate, then ONE full-width output projection
    ctx = jnp.concatenate(heads, axis=-1)                            # (S, D)
    proj = jnp.dot(ctx.astype(cd), wp_ref[...],
                   preferred_element_type=jnp.float32) + bp_ref[...]  # (S, D)
    # TODO(synk): hidden dropout (p_drop_hidden) is identity (eval mode).

    h1 = _layer_norm(x + proj, g1_ref[...], be1_ref[...])   # norm1(x + proj(h))

    # ---- position-wise feed-forward: fc2(gelu(fc1(h1))) ----------------------
    f = jnp.dot(h1.astype(cd), w1_ref[...],
                preferred_element_type=jnp.float32) + b1_ref[...]
    f = _gelu(f)
    f = jnp.dot(f.astype(cd), w2_ref[...],
                preferred_element_type=jnp.float32) + b2_ref[...]

    o_ref[...] = _layer_norm(h1 + f, g2_ref[...], be2_ref[...]).astype(o_ref.dtype)


# ----------------------------------------------------------------------------
# Wrapper: host-side one-time weight layout + single pallas_call
# ----------------------------------------------------------------------------
@functools.partial(jax.jit, static_argnames=("n_heads", "matmul_dtype"))
def block_forward(params, x, mask, *, n_heads, matmul_dtype=jnp.bfloat16):
    B, S, D = x.shape
    H = n_heads
    Dff = params["w1"].shape[1]
    cd = matmul_dtype

    # One-time host-side layout: concatenate Q/K/V weights so the kernel does a
    # single full-width projection matmul.  PyTorch Linear stored as (in, out).
    wqkv = jnp.concatenate([params["wq"], params["wk"], params["wv"]],
                           axis=1).astype(cd)                         # (D, 3D)
    bqkv = jnp.concatenate([params["bq"], params["bk"], params["bv"]], axis=1)
    wp = params["wp"].astype(cd)                                      # (D, D)
    w1 = params["w1"].astype(cd)                                      # (D, Dff)
    w2 = params["w2"].astype(cd)                                      # (Dff, D)
    mask3 = mask.astype(jnp.float32)[:, None, :]                      # (B, 1, S)

    # Explicit scoped-VMEM budget: resident weights (double-buffered by default)
    # + one x/out block pair + in-kernel activations, with headroom.
    itm = jnp.dtype(cd).itemsize
    weight_bytes = (wqkv.size + wp.size + w1.size + w2.size) * itm
    small_bytes = (bqkv.size + params["bp"].size + params["b1"].size
                   + params["b2"].size + 4 * D) * 4
    io_bytes = 2 * S * D * 4
    act_bytes = (S * 3 * D + 2 * S * S + S * Dff + 6 * S * D) * 4
    vmem_limit = int(2 * (weight_bytes + small_bytes) + 2 * io_bytes
                     + 2 * act_bytes + (4 << 20))
    vmem_limit = max(16 << 20, min(vmem_limit, 48 << 20))

    def full(shape):
        # Full-array block, constant index_map -> stays VMEM-resident.
        return pl.BlockSpec(shape, lambda b: (0,) * len(shape))

    kernel = functools.partial(block_kernel, n_heads=H)

    return pl.pallas_call(
        kernel,
        out_shape=jax.ShapeDtypeStruct((B, S, D), jnp.float32),
        grid=(B,),
        in_specs=[
            pl.BlockSpec((None, S, D), lambda b: (b, 0, 0)),   # x   (per batch)
            pl.BlockSpec((None, 1, S), lambda b: (b, 0, 0)),   # mask (per batch)
            full((D, 3 * D)), full((1, 3 * D)),                # Wqkv, bqkv
            full((D, D)), full((1, D)),                        # Wp, bp
            full((1, D)), full((1, D)),                        # ln1 gamma, beta
            full((D, Dff)), full((1, Dff)),                    # fc1 w, b
            full((Dff, D)), full((1, D)),                      # fc2 w, b
            full((1, D)), full((1, D)),                        # ln2 gamma, beta
        ],
        out_specs=pl.BlockSpec((None, S, D), lambda b: (b, 0, 0)),
        compiler_params=pltpu.CompilerParams(
            dimension_semantics=("parallel",),   # batch steps shard across TCs
            vmem_limit_bytes=vmem_limit),
    )(x.astype(jnp.float32), mask3,
      wqkv, bqkv, wp, params["bp"],
      params["ln1_g"], params["ln1_b"],
      w1, params["b1"], w2, params["b2"],
      params["ln2_g"], params["ln2_b"])


# ----------------------------------------------------------------------------
# Plain-JAX reference (mirrors the PyTorch forward literally) + params
# ----------------------------------------------------------------------------
def block_reference(params, x, mask, *, n_heads):
    B, S, D = x.shape
    H = n_heads
    Dh = D // H
    q = x @ params["wq"] + params["bq"]
    k = x @ params["wk"] + params["bk"]
    v = x @ params["wv"] + params["bv"]
    split = lambda t: t.reshape(B, S, H, Dh).transpose(0, 2, 1, 3)      # (B,H,S,Dh)
    q, k, v = split(q), split(k), split(v)
    scores = (q @ k.transpose(0, 1, 3, 2)) / np.sqrt(Dh)
    scores = scores - 10000.0 * (1.0 - mask.astype(jnp.float32)[:, None, None, :])
    p = jax.nn.softmax(scores, axis=-1)
    ctx = (p @ v).transpose(0, 2, 1, 3).reshape(B, S, D)
    h = ctx @ params["wp"] + params["bp"]

    def ln(t, g, b, eps=1e-12):
        u = t.mean(-1, keepdims=True)
        s = ((t - u) ** 2).mean(-1, keepdims=True)
        return g * ((t - u) / jnp.sqrt(s + eps)) + b

    h1 = ln(x + h, params["ln1_g"], params["ln1_b"])
    f = h1 @ params["w1"] + params["b1"]
    f = f * 0.5 * (1.0 + _erf_exact(f / np.sqrt(2.0)))
    f = f @ params["w2"] + params["b2"]
    return ln(h1 + f, params["ln2_g"], params["ln2_b"])


def init_params(key, D, Dff):
    def linear(k, din, dout):
        kw, kb = jax.random.split(k)
        bound = 1.0 / np.sqrt(din)
        w = jax.random.uniform(kw, (din, dout), jnp.float32, -bound, bound)
        b = jax.random.uniform(kb, (1, dout), jnp.float32, -bound, bound)
        return w, b

    ks = jax.random.split(key, 6)
    p = {}
    p["wq"], p["bq"] = linear(ks[0], D, D)
    p["wk"], p["bk"] = linear(ks[1], D, D)
    p["wv"], p["bv"] = linear(ks[2], D, D)
    p["wp"], p["bp"] = linear(ks[3], D, D)
    p["w1"], p["b1"] = linear(ks[4], D, Dff)
    p["w2"], p["b2"] = linear(ks[5], Dff, D)
    p["ln1_g"] = jnp.ones((1, D), jnp.float32)
    p["ln1_b"] = jnp.zeros((1, D), jnp.float32)
    p["ln2_g"] = jnp.ones((1, D), jnp.float32)
    p["ln2_b"] = jnp.zeros((1, D), jnp.float32)
    return p


if __name__ == "__main__":
    # Small but lane-dense shapes: D multiple of 128, batch=4 so each v7x
    # TensorCore gets two "parallel" grid steps.
    B, S, D, H, Dff = 4, 16, 128, 4, 256

    key = jax.random.PRNGKey(0)
    key, kx = jax.random.split(key)
    x = jax.random.normal(kx, (B, S, D), jnp.float32)
    mask = jnp.ones((B, S), jnp.float32)
    mask = mask.at[1, S - 3:].set(0.0)     # a few padded key positions

    params = init_params(key, D, Dff)

    # Default path: bf16 MXU operands, f32 accumulation.
    out = jax.block_until_ready(block_forward(params, x, mask, n_heads=H))
    assert out.shape == (B, S, D), out.shape
    assert out.dtype == jnp.float32
    assert bool(jnp.all(jnp.isfinite(out)))

    ref = block_reference(params, x, mask, n_heads=H)
    np.testing.assert_allclose(np.asarray(out), np.asarray(ref),
                               atol=5e-2, rtol=5e-2)

    # f32-operand path for tighter parity with the PyTorch forward.
    out_f32 = jax.block_until_ready(
        block_forward(params, x, mask, n_heads=H, matmul_dtype=jnp.float32))
    np.testing.assert_allclose(np.asarray(out_f32), np.asarray(ref),
                               atol=5e-2, rtol=5e-2)

    print("KERNEL_OK")
</pallas_src>

<mosaic_0001>
module attributes {stable_mosaic.version = 11 : i64} {
  func.func @block_kernel(%arg0: i32, %arg1: memref<1x16x128xf32, #tpu.memory_space<vmem>>, %arg2: memref<1x1x16xf32, #tpu.memory_space<vmem>>, %arg3: memref<128x384xbf16, #tpu.memory_space<vmem>>, %arg4: memref<1x384xf32, #tpu.memory_space<vmem>>, %arg5: memref<128x128xbf16, #tpu.memory_space<vmem>>, %arg6: memref<1x128xf32, #tpu.memory_space<vmem>>, %arg7: memref<1x128xf32, #tpu.memory_space<vmem>>, %arg8: memref<1x128xf32, #tpu.memory_space<vmem>>, %arg9: memref<128x256xbf16, #tpu.memory_space<vmem>>, %arg10: memref<1x256xf32, #tpu.memory_space<vmem>>, %arg11: memref<256x128xbf16, #tpu.memory_space<vmem>>, %arg12: memref<1x128xf32, #tpu.memory_space<vmem>>, %arg13: memref<1x128xf32, #tpu.memory_space<vmem>>, %arg14: memref<1x128xf32, #tpu.memory_space<vmem>>, %arg15: memref<1x16x128xf32, #tpu.memory_space<vmem>>) attributes {dimension_semantics = [#tpu.dimension_semantics<parallel>], iteration_bounds = array<i64: 4>, scalar_prefetch = 0 : i64, scratch_operands = 0 : i64, tpu.core_type = #tpu.core_type<tc>, window_params = [{transform_indices = @transform_0, window_bounds = array<i64: 1, 16, 128>}, {transform_indices = @transform_1, window_bounds = array<i64: 1, 1, 16>}, {pipeline_mode = #tpu.pipeline_mode<synchronous>, transform_indices = @transform_2, window_bounds = array<i64: 128, 384>}, {pipeline_mode = #tpu.pipeline_mode<synchronous>, transform_indices = @transform_3, window_bounds = array<i64: 1, 384>}, {pipeline_mode = #tpu.pipeline_mode<synchronous>, transform_indices = @transform_4, window_bounds = array<i64: 128, 128>}, {pipeline_mode = #tpu.pipeline_mode<synchronous>, transform_indices = @transform_5, window_bounds = array<i64: 1, 128>}, {pipeline_mode = #tpu.pipeline_mode<synchronous>, transform_indices = @transform_6, window_bounds = array<i64: 1, 128>}, {pipeline_mode = #tpu.pipeline_mode<synchronous>, transform_indices = @transform_7, window_bounds = array<i64: 1, 128>}, {pipeline_mode = #tpu.pipeline_mode<synchronous>, transform_indices = @transform_8, window_bounds = array<i64: 128, 256>}, {pipeline_mode = #tpu.pipeline_mode<synchronous>, transform_indices = @transform_9, window_bounds = array<i64: 1, 256>}, {pipeline_mode = #tpu.pipeline_mode<synchronous>, transform_indices = @transform_10, window_bounds = array<i64: 256, 128>}, {pipeline_mode = #tpu.pipeline_mode<synchronous>, transform_indices = @transform_11, window_bounds = array<i64: 1, 128>}, {pipeline_mode = #tpu.pipeline_mode<synchronous>, transform_indices = @transform_12, window_bounds = array<i64: 1, 128>}, {pipeline_mode = #tpu.pipeline_mode<synchronous>, transform_indices = @transform_13, window_bounds = array<i64: 1, 128>}, {transform_indices = @transform_14, window_bounds = array<i64: 1, 16, 128>}]} {
    %c0 = arith.constant 0 : index
    %c0_0 = arith.constant 0 : index
    %c0_1 = arith.constant 0 : index
    %0 = vector.load %arg1[%c0, %c0_0, %c0_1] : memref<1x16x128xf32, #tpu.memory_space<vmem>>, vector<1x16x128xf32>
    %1 = vector.shape_cast %0 : vector<1x16x128xf32> to vector<16x128xf32>
    %2 = arith.truncf %1 : vector<16x128xf32> to vector<16x128xbf16>
    %c0_2 = arith.constant 0 : index
    %c0_3 = arith.constant 0 : index
    %3 = vector.load %arg3[%c0_2, %c0_3] : memref<128x384xbf16, #tpu.memory_space<vmem>>, vector<128x384xbf16>
    %cst = arith.constant dense<0.000000e+00> : vector<16x384xf32>
    %4 = tpu.matmul %2, %3, %cst {dimension_numbers = #tpu.dot_dimension_numbers<[1], [0], [0], [1], [0, 0, 1, 1], [], []>} : vector<16x128xbf16>, vector<128x384xbf16>, vector<16x384xf32> -> vector<16x384xf32>
    %c0_4 = arith.constant 0 : index
    %c0_5 = arith.constant 0 : index
    %5 = vector.load %arg4[%c0_4, %c0_5] : memref<1x384xf32, #tpu.memory_space<vmem>>, vector<1x384xf32>
    %6 = vector.broadcast %5 : vector<1x384xf32> to vector<16x384xf32>
    %7 = arith.addf %4, %6 : vector<16x384xf32>
    %c0_6 = arith.constant 0 : index
    %c0_7 = arith.constant 0 : index
    %c0_8 = arith.constant 0 : index
    %8 = vector.load %arg2[%c0_6, %c0_7, %c0_8] : memref<1x1x16xf32, #tpu.memory_space<vmem>>, vector<1x1x16xf32>
    %9 = vector.shape_cast %8 : vector<1x1x16xf32> to vector<1x16xf32>
    %cst_9 = arith.constant 1.000000e+00 : f32
    %10 = vector.broadcast %cst_9 : f32 to vector<1x16xf32>
    %11 = arith.subf %10, %9 : vector<1x16xf32>
    %cst_10 = arith.constant 1.000000e+04 : f32
    %12 = vector.broadcast %cst_10 : f32 to vector<1x16xf32>
    %13 = arith.mulf %12, %11 : vector<1x16xf32>
    %14 = vector.extract_strided_slice %7 {offsets = [0, 0], sizes = [16, 32], strides = [1, 1]} : vector<16x384xf32> to vector<16x32xf32>
    %15 = vector.extract_strided_slice %7 {offsets = [0, 128], sizes = [16, 32], strides = [1, 1]} : vector<16x384xf32> to vector<16x32xf32>
    %16 = vector.extract_strided_slice %7 {offsets = [0, 256], sizes = [16, 32], strides = [1, 1]} : vector<16x384xf32> to vector<16x32xf32>
    %17 = arith.truncf %14 : vector<16x32xf32> to vector<16x32xbf16>
    %18 = arith.truncf %15 : vector<16x32xf32> to vector<16x32xbf16>
    %cst_11 = arith.constant dense<0.000000e+00> : vector<16x16xf32>
    %19 = tpu.matmul %17, %18, %cst_11 {dimension_numbers = #tpu.dot_dimension_numbers<[1], [1], [0], [0], [0, 0, 1, 0], [], []>} : vector<16x32xbf16>, vector<16x32xbf16>, vector<16x16xf32> -> vector<16x16xf32>
    %cst_12 = arith.constant 0.176776692 : f32
    %20 = vector.broadcast %cst_12 : f32 to vector<16x16xf32>
    %21 = arith.mulf %19, %20 : vector<16x16xf32>
    %22 = vector.broadcast %13 : vector<1x16xf32> to vector<16x16xf32>
    %23 = arith.subf %21, %22 : vector<16x16xf32>
    %cst_13 = arith.constant dense<0xFF800000> : vector<16xf32>
    %24 = vector.multi_reduction <maximumf>, %23, %cst_13 [1] : vector<16x16xf32> to vector<16xf32>
    %25 = vector.shape_cast %24 : vector<16xf32> to vector<16x1xf32>
    %26 = vector.broadcast %25 : vector<16x1xf32> to vector<16x16xf32>
    %27 = arith.subf %23, %26 : vector<16x16xf32>
    %28 = math.exp %27 : vector<16x16xf32>
    %cst_14 = arith.constant dense<0.000000e+00> : vector<16xf32>
    %29 = vector.multi_reduction <add>, %28, %cst_14 [1] : vector<16x16xf32> to vector<16xf32>
    %30 = vector.shape_cast %29 : vector<16xf32> to vector<16x1xf32>
    %31 = tpu.reciprocal %30 {approx = true} : vector<16x1xf32> -> vector<16x1xf32>
    %32 = vector.broadcast %31 : vector<16x1xf32> to vector<16x16xf32>
    %33 = arith.mulf %28, %32 : vector<16x16xf32>
    %34 = arith.truncf %33 : vector<16x16xf32> to vector<16x16xbf16>
    %35 = arith.truncf %16 : vector<16x32xf32> to vector<16x32xbf16>
    %cst_15 = arith.constant dense<0.000000e+00> : vector<16x32xf32>
    %36 = tpu.matmul %34, %35, %cst_15 {dimension_numbers = #tpu.dot_dimension_numbers<[1], [0], [0], [1], [0, 0, 1, 1], [], []>} : vector<16x16xbf16>, vector<16x32xbf16>, vector<16x32xf32> -> vector<16x32xf32>
    %37 = vector.extract_strided_slice %7 {offsets = [0, 32], sizes = [16, 32], strides = [1, 1]} : vector<16x384xf32> to vector<16x32xf32>
    %38 = vector.extract_strided_slice %7 {offsets = [0, 160], sizes = [16, 32], strides = [1, 1]} : vector<16x384xf32> to vector<16x32xf32>
    %39 = vector.extract_strided_slice %7 {offsets = [0, 288], sizes = [16, 32], strides = [1, 1]} : vector<16x384xf32> to vector<16x32xf32>
    %40 = arith.truncf %37 : vector<16x32xf32> to vector<16x32xbf16>
    %41 = arith.truncf %38 : vector<16x32xf32> to vector<16x32xbf16>
    %cst_16 = arith.constant dense<0.000000e+00> : vector<16x16xf32>
    %42 = tpu.matmul %40, %41, %cst_16 {dimension_numbers = #tpu.dot_dimension_numbers<[1], [1], [0], [0], [0, 0, 1, 0], [], []>} : vector<16x32xbf16>, vector<16x32xbf16>, vector<16x16xf32> -> vector<16x16xf32>
    %cst_17 = arith.constant 0.176776692 : f32
    %43 = vector.broadcast %cst_17 : f32 to vector<16x16xf32>
    %44 = arith.mulf %42, %43 : vector<16x16xf32>
    %45 = vector.broadcast %13 : vector<1x16xf32> to vector<16x16xf32>
    %46 = arith.subf %44, %45 : vector<16x16xf32>
    %cst_18 = arith.constant dense<0xFF800000> : vector<16xf32>
    %47 = vector.multi_reduction <maximumf>, %46, %cst_18 [1] : vector<16x16xf32> to vector<16xf32>
    %48 = vector.shape_cast %47 : vector<16xf32> to vector<16x1xf32>
    %49 = vector.broadcast %48 : vector<16x1xf32> to vector<16x16xf32>
    %50 = arith.subf %46, %49 : vector<16x16xf32>
    %51 = math.exp %50 : vector<16x16xf32>
    %cst_19 = arith.constant dense<0.000000e+00> : vector<16xf32>
    %52 = vector.multi_reduction <add>, %51, %cst_19 [1] : vector<16x16xf32> to vector<16xf32>
    %53 = vector.shape_cast %52 : vector<16xf32> to vector<16x1xf32>
    %54 = tpu.reciprocal %53 {approx = true} : vector<16x1xf32> -> vector<16x1xf32>
    %55 = vector.broadcast %54 : vector<16x1xf32> to vector<16x16xf32>
    %56 = arith.mulf %51, %55 : vector<16x16xf32>
    %57 = arith.truncf %56 : vector<16x16xf32> to vector<16x16xbf16>
    %58 = arith.truncf %39 : vector<16x32xf32> to vector<16x32xbf16>
    %cst_20 = arith.constant dense<0.000000e+00> : vector<16x32xf32>
    %59 = tpu.matmul %57, %58, %cst_20 {dimension_numbers = #tpu.dot_dimension_numbers<[1], [0], [0], [1], [0, 0, 1, 1], [], []>} : vector<16x16xbf16>, vector<16x32xbf16>, vector<16x32xf32> -> vector<16x32xf32>
    %60 = vector.extract_strided_slice %7 {offsets = [0, 64], sizes = [16, 32], strides = [1, 1]} : vector<16x384xf32> to vector<16x32xf32>
    %61 = vector.extract_strided_slice %7 {offsets = [0, 192], sizes = [16, 32], strides = [1, 1]} : vector<16x384xf32> to vector<16x32xf32>
    %62 = vector.extract_strided_slice %7 {offsets = [0, 320], sizes = [16, 32], strides = [1, 1]} : vector<16x384xf32> to vector<16x32xf32>
    %63 = arith.truncf %60 : vector<16x32xf32> to vector<16x32xbf16>
    %64 = arith.truncf %61 : vector<16x32xf32> to vector<16x32xbf16>
    %cst_21 = arith.constant dense<0.000000e+00> : vector<16x16xf32>
    %65 = tpu.matmul %63, %64, %cst_21 {dimension_numbers = #tpu.dot_dimension_numbers<[1], [1], [0], [0], [0, 0, 1, 0], [], []>} : vector<16x32xbf16>, vector<16x32xbf16>, vector<16x16xf32> -> vector<16x16xf32>
    %cst_22 = arith.constant 0.176776692 : f32
    %66 = vector.broadcast %cst_22 : f32 to vector<16x16xf32>
    %67 = arith.mulf %65, %66 : vector<16x16xf32>
    %68 = vector.broadcast %13 : vector<1x16xf32> to vector<16x16xf32>
    %69 = arith.subf %67, %68 : vector<16x16xf32>
    %cst_23 = arith.constant dense<0xFF800000> : vector<16xf32>
    %70 = vector.multi_reduction <maximumf>, %69, %cst_23 [1] : vector<16x16xf32> to vector<16xf32>
    %71 = vector.shape_cast %70 : vector<16xf32> to vector<16x1xf32>
    %72 = vector.broadcast %71 : vector<16x1xf32> to vector<16x16xf32>
    %73 = arith.subf %69, %72 : vector<16x16xf32>
    %74 = math.exp %73 : vector<16x16xf32>
    %cst_24 = arith.constant dense<0.000000e+00> : vector<16xf32>
    %75 = vector.multi_reduction <add>, %74, %cst_24 [1] : vector<16x16xf32> to vector<16xf32>
    %76 = vector.shape_cast %75 : vector<16xf32> to vector<16x1xf32>
    %77 = tpu.reciprocal %76 {approx = true} : vector<16x1xf32> -> vector<16x1xf32>
    %78 = vector.broadcast %77 : vector<16x1xf32> to vector<16x16xf32>
    %79 = arith.mulf %74, %78 : vector<16x16xf32>
    %80 = arith.truncf %79 : vector<16x16xf32> to vector<16x16xbf16>
    %81 = arith.truncf %62 : vector<16x32xf32> to vector<16x32xbf16>
    %cst_25 = arith.constant dense<0.000000e+00> : vector<16x32xf32>
    %82 = tpu.matmul %80, %81, %cst_25 {dimension_numbers = #tpu.dot_dimension_numbers<[1], [0], [0], [1], [0, 0, 1, 1], [], []>} : vector<16x16xbf16>, vector<16x32xbf16>, vector<16x32xf32> -> vector<16x32xf32>
    %83 = vector.extract_strided_slice %7 {offsets = [0, 96], sizes = [16, 32], strides = [1, 1]} : vector<16x384xf32> to vector<16x32xf32>
    %84 = vector.extract_strided_slice %7 {offsets = [0, 224], sizes = [16, 32], strides = [1, 1]} : vector<16x384xf32> to vector<16x32xf32>
    %85 = vector.extract_strided_slice %7 {offsets = [0, 352], sizes = [16, 32], strides = [1, 1]} : vector<16x384xf32> to vector<16x32xf32>
    %86 = arith.truncf %83 : vector<16x32xf32> to vector<16x32xbf16>
    %87 = arith.truncf %84 : vector<16x32xf32> to vector<16x32xbf16>
    %cst_26 = arith.constant dense<0.000000e+00> : vector<16x16xf32>
    %88 = tpu.matmul %86, %87, %cst_26 {dimension_numbers = #tpu.dot_dimension_numbers<[1], [1], [0], [0], [0, 0, 1, 0], [], []>} : vector<16x32xbf16>, vector<16x32xbf16>, vector<16x16xf32> -> vector<16x16xf32>
    %cst_27 = arith.constant 0.176776692 : f32
    %89 = vector.broadcast %cst_27 : f32 to vector<16x16xf32>
    %90 = arith.mulf %88, %89 : vector<16x16xf32>
    %91 = vector.broadcast %13 : vector<1x16xf32> to vector<16x16xf32>
    %92 = arith.subf %90, %91 : vector<16x16xf32>
    %cst_28 = arith.constant dense<0xFF800000> : vector<16xf32>
    %93 = vector.multi_reduction <maximumf>, %92, %cst_28 [1] : vector<16x16xf32> to vector<16xf32>
    %94 = vector.shape_cast %93 : vector<16xf32> to vector<16x1xf32>
    %95 = vector.broadcast %94 : vector<16x1xf32> to vector<16x16xf32>
    %96 = arith.subf %92, %95 : vector<16x16xf32>
    %97 = math.exp %96 : vector<16x16xf32>
    %cst_29 = arith.constant dense<0.000000e+00> : vector<16xf32>
    %98 = vector.multi_reduction <add>, %97, %cst_29 [1] : vector<16x16xf32> to vector<16xf32>
    %99 = vector.shape_cast %98 : vector<16xf32> to vector<16x1xf32>
    %100 = tpu.reciprocal %99 {approx = true} : vector<16x1xf32> -> vector<16x1xf32>
    %101 = vector.broadcast %100 : vector<16x1xf32> to vector<16x16xf32>
    %102 = arith.mulf %97, %101 : vector<16x16xf32>
    %103 = arith.truncf %102 : vector<16x16xf32> to vector<16x16xbf16>
    %104 = arith.truncf %85 : vector<16x32xf32> to vector<16x32xbf16>
    %cst_30 = arith.constant dense<0.000000e+00> : vector<16x32xf32>
    %105 = tpu.matmul %103, %104, %cst_30 {dimension_numbers = #tpu.dot_dimension_numbers<[1], [0], [0], [1], [0, 0, 1, 1], [], []>} : vector<16x16xbf16>, vector<16x32xbf16>, vector<16x32xf32> -> vector<16x32xf32>
    %106 = tpu.concatenate %36, %59, %82, %105 in 1 : vector<16x32xf32>, vector<16x32xf32>, vector<16x32xf32>, vector<16x32xf32> -> vector<16x128xf32>
    %107 = arith.truncf %106 : vector<16x128xf32> to vector<16x128xbf16>
    %c0_31 = arith.constant 0 : index
    %c0_32 = arith.constant 0 : index
    %108 = vector.load %arg5[%c0_31, %c0_32] : memref<128x128xbf16, #tpu.memory_space<vmem>>, vector<128x128xbf16>
    %cst_33 = arith.constant dense<0.000000e+00> : vector<16x128xf32>
    %109 = tpu.matmul %107, %108, %cst_33 {dimension_numbers = #tpu.dot_dimension_numbers<[1], [0], [0], [1], [0, 0, 1, 1], [], []>} : vector<16x128xbf16>, vector<128x128xbf16>, vector<16x128xf32> -> vector<16x128xf32>
    %c0_34 = arith.constant 0 : index
    %c0_35 = arith.constant 0 : index
    %110 = vector.load %arg6[%c0_34, %c0_35] : memref<1x128xf32, #tpu.memory_space<vmem>>, vector<1x128xf32>
    %111 = vector.broadcast %110 : vector<1x128xf32> to vector<16x128xf32>
    %112 = arith.addf %109, %111 : vector<16x128xf32>
    %113 = arith.addf %1, %112 : vector<16x128xf32>
    %c0_36 = arith.constant 0 : index
    %c0_37 = arith.constant 0 : index
    %114 = vector.load %arg7[%c0_36, %c0_37] : memref<1x128xf32, #tpu.memory_space<vmem>>, vector<1x128xf32>
    %c0_38 = arith.constant 0 : index
    %c0_39 = arith.constant 0 : index
    %115 = vector.load %arg8[%c0_38, %c0_39] : memref<1x128xf32, #tpu.memory_space<vmem>>, vector<1x128xf32>
    %cst_40 = arith.constant dense<0.000000e+00> : vector<16xf32>
    %116 = vector.multi_reduction <add>, %113, %cst_40 [1] : vector<16x128xf32> to vector<16xf32>
    %117 = vector.shape_cast %116 : vector<16xf32> to vector<16x1xf32>
    %cst_41 = arith.constant 1.280000e+02 : f32
    %118 = vector.broadcast %cst_41 : f32 to vector<16x1xf32>
    %119 = arith.divf %117, %118 : vector<16x1xf32>
    %120 = vector.broadcast %119 : vector<16x1xf32> to vector<16x128xf32>
    %121 = arith.subf %113, %120 : vector<16x128xf32>
    %122 = arith.mulf %121, %121 : vector<16x128xf32>
    %cst_42 = arith.constant dense<0.000000e+00> : vector<16xf32>
    %123 = vector.multi_reduction <add>, %122, %cst_42 [1] : vector<16x128xf32> to vector<16xf32>
    %124 = vector.shape_cast %123 : vector<16xf32> to vector<16x1xf32>
    %cst_43 = arith.constant 1.280000e+02 : f32
    %125 = vector.broadcast %cst_43 : f32 to vector<16x1xf32>
    %126 = arith.divf %124, %125 : vector<16x1xf32>
    %cst_44 = arith.constant 9.99999996E-13 : f32
    %127 = vector.broadcast %cst_44 : f32 to vector<16x1xf32>
    %128 = arith.addf %126, %127 : vector<16x1xf32>
    %129 = math.rsqrt %128 : vector<16x1xf32>
    %130 = vector.broadcast %129 : vector<16x1xf32> to vector<16x128xf32>
    %131 = arith.mulf %121, %130 : vector<16x128xf32>
    %132 = vector.broadcast %114 : vector<1x128xf32> to vector<16x128xf32>
    %133 = arith.mulf %132, %131 : vector<16x128xf32>
    %134 = vector.broadcast %115 : vector<1x128xf32> to vector<16x128xf32>
    %135 = arith.addf %133, %134 : vector<16x128xf32>
    %136 = arith.truncf %135 : vector<16x128xf32> to vector<16x128xbf16>
    %c0_45 = arith.constant 0 : index
    %c0_46 = arith.constant 0 : index
    %137 = vector.load %arg9[%c0_45, %c0_46] : memref<128x256xbf16, #tpu.memory_space<vmem>>, vector<128x256xbf16>
    %cst_47 = arith.constant dense<0.000000e+00> : vector<16x256xf32>
    %138 = tpu.matmul %136, %137, %cst_47 {dimension_numbers = #tpu.dot_dimension_numbers<[1], [0], [0], [1], [0, 0, 1, 1], [], []>} : vector<16x128xbf16>, vector<128x256xbf16>, vector<16x256xf32> -> vector<16x256xf32>
    %c0_48 = arith.constant 0 : index
    %c0_49 = arith.constant 0 : index
    %139 = vector.load %arg10[%c0_48, %c0_49] : memref<1x256xf32, #tpu.memory_space<vmem>>, vector<1x256xf32>
    %140 = vector.broadcast %139 : vector<1x256xf32> to vector<16x256xf32>
    %141 = arith.addf %138, %140 : vector<16x256xf32>
    %cst_50 = arith.constant 5.000000e-01 : f32
    %142 = vector.broadcast %cst_50 : f32 to vector<16x256xf32>
    %143 = arith.mulf %141, %142 : vector<16x256xf32>
    %cst_51 = arith.constant 0.707106769 : f32
    %144 = vector.broadcast %cst_51 : f32 to vector<16x256xf32>
    %145 = arith.mulf %141, %144 : vector<16x256xf32>
    %146 = math.absf %145 : vector<16x256xf32>
    %cst_52 = arith.constant 0.327591091 : f32
    %147 = vector.broadcast %cst_52 : f32 to vector<16x256xf32>
    %148 = arith.mulf %147, %146 : vector<16x256xf32>
    %cst_53 = arith.constant 1.000000e+00 : f32
    %149 = vector.broadcast %cst_53 : f32 to vector<16x256xf32>
    %150 = arith.addf %149, %148 : vector<16x256xf32>
    %151 = tpu.reciprocal %150 {approx = true} : vector<16x256xf32> -> vector<16x256xf32>
    %cst_54 = arith.constant 1.06140542 : f32
    %152 = vector.broadcast %cst_54 : f32 to vector<16x256xf32>
    %153 = arith.mulf %152, %151 : vector<16x256xf32>
    %cst_55 = arith.constant -1.45315206 : f32
    %154 = vector.broadcast %cst_55 : f32 to vector<16x256xf32>
    %155 = arith.addf %153, %154 : vector<16x256xf32>
    %156 = arith.mulf %155, %151 : vector<16x256xf32>
    %cst_56 = arith.constant 1.42141378 : f32
    %157 = vector.broadcast %cst_56 : f32 to vector<16x256xf32>
    %158 = arith.addf %156, %157 : vector<16x256xf32>
    %159 = arith.mulf %158, %151 : vector<16x256xf32>
    %cst_57 = arith.constant -0.284496725 : f32
    %160 = vector.broadcast %cst_57 : f32 to vector<16x256xf32>
    %161 = arith.addf %159, %160 : vector<16x256xf32>
    %162 = arith.mulf %161, %151 : vector<16x256xf32>
    %cst_58 = arith.constant 0.254829586 : f32
    %163 = vector.broadcast %cst_58 : f32 to vector<16x256xf32>
    %164 = arith.addf %162, %163 : vector<16x256xf32>
    %165 = arith.mulf %164, %151 : vector<16x256xf32>
    %cst_59 = arith.constant 0.000000e+00 : f32
    %166 = vector.broadcast %cst_59 : f32 to vector<16x256xf32>
    %167 = arith.subf %166, %146 : vector<16x256xf32>
    %168 = arith.mulf %167, %146 : vector<16x256xf32>
    %169 = math.exp %168 : vector<16x256xf32>
    %170 = arith.mulf %165, %169 : vector<16x256xf32>
    %cst_60 = arith.constant 1.000000e+00 : f32
    %171 = vector.broadcast %cst_60 : f32 to vector<16x256xf32>
    %172 = arith.subf %171, %170 : vector<16x256xf32>
    %cst_61 = arith.constant 0.000000e+00 : f32
    %173 = vector.broadcast %cst_61 : f32 to vector<16x256xf32>
    %174 = arith.cmpf oge, %145, %173 : vector<16x256xf32>
    %cst_62 = arith.constant 0.000000e+00 : f32
    %175 = vector.broadcast %cst_62 : f32 to vector<16x256xf32>
    %176 = arith.subf %175, %172 : vector<16x256xf32>
    %177 = arith.select %174, %172, %176 : vector<16x256xi1>, vector<16x256xf32>
    %cst_63 = arith.constant 1.000000e+00 : f32
    %178 = vector.broadcast %cst_63 : f32 to vector<16x256xf32>
    %179 = arith.addf %178, %177 : vector<16x256xf32>
    %180 = arith.mulf %143, %179 : vector<16x256xf32>
    %181 = arith.truncf %180 : vector<16x256xf32> to vector<16x256xbf16>
    %c0_64 = arith.constant 0 : index
    %c0_65 = arith.constant 0 : index
    %182 = vector.load %arg11[%c0_64, %c0_65] : memref<256x128xbf16, #tpu.memory_space<vmem>>, vector<256x128xbf16>
    %cst_66 = arith.constant dense<0.000000e+00> : vector<16x128xf32>
    %183 = tpu.matmul %181, %182, %cst_66 {dimension_numbers = #tpu.dot_dimension_numbers<[1], [0], [0], [1], [0, 0, 1, 1], [], []>} : vector<16x256xbf16>, vector<256x128xbf16>, vector<16x128xf32> -> vector<16x128xf32>
    %c0_67 = arith.constant 0 : index
    %c0_68 = arith.constant 0 : index
    %184 = vector.load %arg12[%c0_67, %c0_68] : memref<1x128xf32, #tpu.memory_space<vmem>>, vector<1x128xf32>
    %185 = vector.broadcast %184 : vector<1x128xf32> to vector<16x128xf32>
    %186 = arith.addf %183, %185 : vector<16x128xf32>
    %187 = arith.addf %135, %186 : vector<16x128xf32>
    %c0_69 = arith.constant 0 : index
    %c0_70 = arith.constant 0 : index
    %188 = vector.load %arg13[%c0_69, %c0_70] : memref<1x128xf32, #tpu.memory_space<vmem>>, vector<1x128xf32>
    %c0_71 = arith.constant 0 : index
    %c0_72 = arith.constant 0 : index
    %189 = vector.load %arg14[%c0_71, %c0_72] : memref<1x128xf32, #tpu.memory_space<vmem>>, vector<1x128xf32>
    %cst_73 = arith.constant dense<0.000000e+00> : vector<16xf32>
    %190 = vector.multi_reduction <add>, %187, %cst_73 [1] : vector<16x128xf32> to vector<16xf32>
    %191 = vector.shape_cast %190 : vector<16xf32> to vector<16x1xf32>
    %cst_74 = arith.constant 1.280000e+02 : f32
    %192 = vector.broadcast %cst_74 : f32 to vector<16x1xf32>
    %193 = arith.divf %191, %192 : vector<16x1xf32>
    %194 = vector.broadcast %193 : vector<16x1xf32> to vector<16x128xf32>
    %195 = arith.subf %187, %194 : vector<16x128xf32>
    %196 = arith.mulf %195, %195 : vector<16x128xf32>
    %cst_75 = arith.constant dense<0.000000e+00> : vector<16xf32>
    %197 = vector.multi_reduction <add>, %196, %cst_75 [1] : vector<16x128xf32> to vector<16xf32>
    %198 = vector.shape_cast %197 : vector<16xf32> to vector<16x1xf32>
    %cst_76 = arith.constant 1.280000e+02 : f32
    %199 = vector.broadcast %cst_76 : f32 to vector<16x1xf32>
    %200 = arith.divf %198, %199 : vector<16x1xf32>
    %cst_77 = arith.constant 9.99999996E-13 : f32
    %201 = vector.broadcast %cst_77 : f32 to vector<16x1xf32>
    %202 = arith.addf %200, %201 : vector<16x1xf32>
    %203 = math.rsqrt %202 : vector<16x1xf32>
    %204 = vector.broadcast %203 : vector<16x1xf32> to vector<16x128xf32>
    %205 = arith.mulf %195, %204 : vector<16x128xf32>
    %206 = vector.broadcast %188 : vector<1x128xf32> to vector<16x128xf32>
    %207 = arith.mulf %206, %205 : vector<16x128xf32>
    %208 = vector.broadcast %189 : vector<1x128xf32> to vector<16x128xf32>
    %209 = arith.addf %207, %208 : vector<16x128xf32>
    %c0_78 = arith.constant 0 : index
    %c0_79 = arith.constant 0 : index
    %c0_80 = arith.constant 0 : index
    %210 = vector.load %arg15[%c0_78, %c0_79, %c0_80] : memref<1x16x128xf32, #tpu.memory_space<vmem>>, vector<1x16x128xf32>
    %211 = vector.shape_cast %210 : vector<1x16x128xf32> to vector<16x128xf32>
    %212 = vector.shape_cast %209 : vector<16x128xf32> to vector<1x16x128xf32>
    tpu.vector_store %arg15[%c0_78, %c0_79, %c0_80], %212 {strides = array<i32>} : memref<1x16x128xf32, #tpu.memory_space<vmem>>, vector<1x16x128xf32>,
    return
  }
  func.func @transform_0(%arg0: i32) -> (i32, i32, i32) {
    %c0_i32 = arith.constant 0 : i32
    %c0_i32_0 = arith.constant 0 : i32
    %c0_i32_1 = arith.constant 0 : i32
    return %arg0, %c0_i32, %c0_i32_0 : i32, i32, i32
  }
  func.func @transform_1(%arg0: i32) -> (i32, i32, i32) {
    %c0_i32 = arith.constant 0 : i32
    %c0_i32_0 = arith.constant 0 : i32
    %c0_i32_1 = arith.constant 0 : i32
    return %arg0, %c0_i32, %c0_i32_0 : i32, i32, i32
  }
  func.func @transform_2(%arg0: i32) -> (i32, i32) {
    %c0_i32 = arith.constant 0 : i32
    %c0_i32_0 = arith.constant 0 : i32
    %c0_i32_1 = arith.constant 0 : i32
    return %c0_i32, %c0_i32_0 : i32, i32
  }
  func.func @transform_3(%arg0: i32) -> (i32, i32) {
    %c0_i32 = arith.constant 0 : i32
    %c0_i32_0 = arith.constant 0 : i32
    %c0_i32_1 = arith.constant 0 : i32
    return %c0_i32, %c0_i32_0 : i32, i32
  }
  func.func @transform_4(%arg0: i32) -> (i32, i32) {
    %c0_i32 = arith.constant 0 : i32
    %c0_i32_0 = arith.constant 0 : i32
    %c0_i32_1 = arith.constant 0 : i32
    return %c0_i32, %c0_i32_0 : i32, i32
  }
  func.func @transform_5(%arg0: i32) -> (i32, i32) {
    %c0_i32 = arith.constant 0 : i32
    %c0_i32_0 = arith.constant 0 : i32
    %c0_i32_1 = arith.constant 0 : i32
    return %c0_i32, %c0_i32_0 : i32, i32
  }
  func.func @transform_6(%arg0: i32) -> (i32, i32) {
    %c0_i32 = arith.constant 0 : i32
    %c0_i32_0 = arith.constant 0 : i32
    %c0_i32_1 = arith.constant 0 : i32
    return %c0_i32, %c0_i32_0 : i32, i32
  }
  func.func @transform_7(%arg0: i32) -> (i32, i32) {
    %c0_i32 = arith.constant 0 : i32
    %c0_i32_0 = arith.constant 0 : i32
    %c0_i32_1 = arith.constant 0 : i32
    return %c0_i32, %c0_i32_0 : i32, i32
  }
  func.func @transform_8(%arg0: i32) -> (i32, i32) {
    %c0_i32 = arith.constant 0 : i32
    %c0_i32_0 = arith.constant 0 : i32
    %c0_i32_1 = arith.constant 0 : i32
    return %c0_i32, %c0_i32_0 : i32, i32
  }
  func.func @transform_9(%arg0: i32) -> (i32, i32) {
    %c0_i32 = arith.constant 0 : i32
    %c0_i32_0 = arith.constant 0 : i32
    %c0_i32_1 = arith.constant 0 : i32
    return %c0_i32, %c0_i32_0 : i32, i32
  }
  func.func @transform_10(%arg0: i32) -> (i32, i32) {
    %c0_i32 = arith.constant 0 : i32
    %c0_i32_0 = arith.constant 0 : i32
    %c0_i32_1 = arith.constant 0 : i32
    return %c0_i32, %c0_i32_0 : i32, i32
  }
  func.func @transform_11(%arg0: i32) -> (i32, i32) {
    %c0_i32 = arith.constant 0 : i32
    %c0_i32_0 = arith.constant 0 : i32
    %c0_i32_1 = arith.constant 0 : i32
    return %c0_i32, %c0_i32_0 : i32, i32
  }
  func.func @transform_12(%arg0: i32) -> (i32, i32) {
    %c0_i32 = arith.constant 0 : i32
    %c0_i32_0 = arith.constant 0 : i32
    %c0_i32_1 = arith.constant 0 : i32
    return %c0_i32, %c0_i32_0 : i32, i32
  }
  func.func @transform_13(%arg0: i32) -> (i32, i32) {
    %c0_i32 = arith.constant 0 : i32
    %c0_i32_0 = arith.constant 0 : i32
    %c0_i32_1 = arith.constant 0 : i32
    return %c0_i32, %c0_i32_0 : i32, i32
  }
  func.func @transform_14(%arg0: i32) -> (i32, i32, i32) {
    %c0_i32 = arith.constant 0 : i32
    %c0_i32_0 = arith.constant 0 : i32
    %c0_i32_1 = arith.constant 0 : i32
    return %arg0, %c0_i32, %c0_i32_0 : i32, i32, i32
  }
}

</mosaic_0001>

<bundles_post_ra>
// kernel: block_forward.1
= control target key start
LH: loop header
LB: loop body
LE: loop exit
PB: predicated region body
PF: predicated region fallthrough
CT: control target
= control target key end

     0   :  { %s2876_s0 = inlined_call_operand.vmem [shape: f32[4,16,128], index: 0, kind: input, shape index: {}]   ;;  %s2877_s1 = inlined_call_operand.vmem [shape: f32[4,1,16], index: 1, kind: input, shape index: {}]   ;;  %s2878_s2 = inlined_call_operand.vmem [shape: bf16[128,384], index: 2, kind: input, shape index: {}]   ;;  %s2879_s3 = inlined_call_operand.vmem [shape: f32[1,384], index: 3, kind: input, shape index: {}]   ;;  %s2880_s4 = inlined_call_operand.vmem [shape: bf16[128,128], index: 4, kind: input, shape index: {}]   ;;  %s2881_s5 = inlined_call_operand.vmem [shape: f32[1,128], index: 5, kind: input, shape index: {}]   ;;  %s2882_s6 = inlined_call_operand.vmem [shape: f32[1,128], index: 6, kind: input, shape index: {}]   ;;  %s2883_s7 = inlined_call_operand.vmem [shape: f32[1,128], index: 7, kind: input, shape index: {}]   ;;  %s2884_s8 = inlined_call_operand.vmem [shape: bf16[128,256], index: 8, kind: input, shape index: {}]   ;;  %s2885_s9 = inlined_call_operand.vmem [shape: f32[1,256], index: 9, kind: input, shape index: {}]   ;;  %s2886_s10 = inlined_call_operand.vmem [shape: bf16[256,128], index: 10, kind: input, shape index: {}]   ;;  %s2887_s11 = inlined_call_operand.vmem [shape: f32[1,128], index: 11, kind: input, shape index: {}]   ;;  %s2888_s12 = inlined_call_operand.vmem [shape: f32[1,128], index: 12, kind: input, shape index: {}]   ;;  %s2889_s13 = inlined_call_operand.vmem [shape: f32[1,128], index: 13, kind: input, shape index: {}]   ;;  %s2890_s14 = inlined_call_operand.hbm [shape: f32[4,16,128], index: 14, kind: output, shape index: {}]  }
   0x1   :  { %2897 = sst [smem:[#allocation11_spill]] %s2876_s0 }
   0x2   :  { %19 = vsyncpa [#allocation3], 0 }
   0x3   :  { %21 = vsyncpa [#allocation3 + $0x1], 0  ;;  %s2312_s29 = smov 0   ;;  %s2314_s30 = smov 0  }
   0x4   :  { %s2316_s15 = smov 0   ;;  %s2318_s16 = smov 0  }
   0x5 LB: > { %2898 = sst [smem:[#allocation5_spill]] %s2217_s29  ;;  %s2333_s17 = sadd.s32 4294967295, %s2229_s16   ;;  %s2229_s16 = sphi %s2318_s16, %s2910_s16   ;;  %s2225_s15 = sphi %s2316_s15, %s2912_s15   ;;  %s2221_s30 = sphi %s2314_s30, %s2914_s30   ;;  %s2217_s29 = sphi %s2312_s29, %s2913_s29  }
   0x6   : > { %2899 = sst [smem:[#allocation6_spill]] %s2225_s15  ;;  %s1701_s18 = sadd.s32 4294967294, %s2229_s16  }
   0x7   : > { %2900 = sst [smem:[#allocation7_spill]] %s2229_s16  ;;  %s2337_s19 = sadd.s32 1, %s2229_s16  }
   0x8   : > { %2901 = sst [smem:[#allocation8_spill]] %s2337_s19  ;;  %s338_s20 = sadd.s32 1, %s2225_s15 }
   0x9   : > { %s335_s21 = ssub.s32 %s2229_s16, %s2337_s19  ;;  %p348_p0 = scmp.ne.s32.totalorder %s2225_s15, %s2221_s30 }
   0xa   : > { %p336_p1 = scmp.eq.s32.totalorder %s335_s21, 0  ;;  %p349_p2 = scmp.eq.s32.totalorder %s2333_s17, 3 }
   0xb   : > { %p354_p3 = scmp.ne.s32.totalorder %s2221_s30, %s2217_s29  ;;  %p355_p4 = scmp.eq.s32.totalorder %s1701_s18, 3 }
   0xc   : > { %s2348_s22 = scalar_select %p336_p1, %s2225_s15, %s338_s20  }
   0xd   : > { %p2350_p5 = por %p349_p2, %p348_p0  ;;  %p2354_p6 = por %p355_p4, %p354_p3 }
   0xe   : > { %2902 = sst [smem:[#allocation9_spill]] %s2348_s22  ;;  %p1704_p7 = scmp.ge.s32.totalorder %s2229_s16, 1 }
   0xf   : > { %s2904_s24 = scalar_select %p2354_p6, 1, 0 }
  0x10   : > { %p423_p8 = scmp.lt.s32.totalorder %s2229_s16, 5 }
  0x11   : > { %2905 = sst [smem:[#allocation10_spill]] %s2904_s24 }
  0x12   : > { %p424_p9 = pnand %p1704_p7, %p423_p8 }
  0x13   : > { %p472_p10 = scmp.lt.s32.totalorder (!%p424_p9), %s2333_s17, 3  ;;  %s2906_s0 = sld [smem:[#allocation11_spill]] (!%p424_p9) }
  0x14   : > { %427 = sbr.rel (%p424_p9) target bundleno = 2304 (0x900), region = 76  ;;  %s2231_s29 = smov (!%p424_p9), 96  }
  0x15   : > { %s2233_s18 = smov (!%p424_p9), 32   ;;  %s469_s27 = sand.u32 (!%p424_p9), 1, %s2221_s30  }
  0x16   : > { %s1705_s19 = sshll.u32 (!%p424_p9), %s469_s27, 4 }
  0x17   : > { %s471_s21 = scalar_lea.vmem (!%p424_p9), [#allocation2], %s1705_s19 }
  0x18   : > { %s1627_s25 = sshll.u32 (!%p424_p9), %s471_s21, 4  ;;  %s1628_s25 = int_to_ptr.vmem [resolvable:$true] %s1627_s25 }
  0x19   : > { %v1794_v0 = vld [vmem:[%s2878_s2 + $0xa8] sm:$0xf]  ;;  %v2000_v1 = vld [vmem:[%s2878_s2 + $0xb0] sm:$0xf0]  ;;  %v1999_v2 = vld [vmem:[%s2878_s2 + $0xac] sm:$0xf] }
  0x1a   : > { %v1795_v3 = vor.u32 %v2000_v1, %v1794_v0  ;;  %v1796_v4 = vld [vmem:[%s2878_s2 + $0xb4] sm:$0xf0]  ;;  %v1782_v5 = vld [vmem:[%s2878_s2 + $0x90] sm:$0xf]  ;;  %v1997_v6 = vld [vmem:[%s2878_s2 + $0x98] sm:$0xf0] }
  0x1b   : > { %v1799_v7 = vor.u32 %v1999_v2, %v1796_v4  ;;  %v1996_v8 = vld [vmem:[%s2878_s2 + $0x94] sm:$0xf]  ;;  %v1784_v9 = vld [vmem:[%s2878_s2 + $0x9c] sm:$0xf0]  ;;  %v1783_v10 = vor.u32 %v1997_v6, %v1782_v5  ;;  %v1770_v12 = vld [vmem:[%s2878_s2 + $0x78] sm:$0xf] }
  0x1c   : > { %652 = vmatpush.bf16.msra.mxu0 %v1795_v3  ;;  %v1787_v11 = vor.u32 %v1996_v8, %v1784_v9  ;;  %v1994_v13 = vld [vmem:[%s2878_s2 + $0x80] sm:$0xf0]  ;;  %v1993_v14 = vld [vmem:[%s2878_s2 + $0x7c] sm:$0xf]  ;;  %v1772_v15 = vld [vmem:[%s2878_s2 + $0x84] sm:$0xf0] }
  0x1d   : > { %666 = vmatpush.bf16.msra.mxu1 %v1799_v7  ;;  %v1771_v16 = vor.u32 %v1994_v13, %v1770_v12  ;;  %v1775_v17 = vor.u32 %v1993_v14, %v1772_v15  ;;  %v1758_v18 = vld [vmem:[%s2878_s2 + $0x60] sm:$0xf]  ;;  %v1991_v19 = vld [vmem:[%s2878_s2 + $0x68] sm:$0xf0]  ;;  %v1990_v20 = vld [vmem:[%s2878_s2 + $0x64] sm:$0xf] }
  0x1e   : > { %v1760_v21 = vld [vmem:[%s2878_s2 + $0x6c] sm:$0xf0]  ;;  %v1759_v22 = vor.u32 %v1991_v19, %v1758_v18  ;;  %v2001_v24 = vld [vmem:[%s2878_s2 + $0xb8] sm:$0xf0]  ;;  %v1790_v25 = vld [vmem:[%s2878_s2 + $0x98] sm:$0xf] }
  0x1f   : > { %v1802_v23 = vld [vmem:[%s2878_s2 + $0xb0] sm:$0xf]  ;;  %v1763_v26 = vor.u32 %v1990_v20, %v1760_v21  ;;  %v1746_v27 = vld [vmem:[%s2878_s2 + $0x48] sm:$0xf]  ;;  %v1988_v28 = vld [vmem:[%s2878_s2 + $0x50] sm:$0xf0] }
  0x20   : > { %653 = vmatpush.bf16.msra.mxu0 %v1783_v10  ;;  %v1803_v29 = vor.u32 %v2001_v24, %v1802_v23  ;;  %v1998_v30 = vld [vmem:[%s2878_s2 + $0xa0] sm:$0xf0]  ;;  %v1987_v31 = vld [vmem:[%s2878_s2 + $0x4c] sm:$0xf]  ;;  %v1748_v32 = vld [vmem:[%s2878_s2 + $0x54] sm:$0xf0]  ;;  %v1747_v34 = vor.u32 %v1988_v28, %v1746_v27 }
  0x21   : > { %667 = vmatpush.bf16.msra.mxu1 %v1787_v11  ;;  %v1791_v33 = vor.u32 %v1998_v30, %v1790_v25  ;;  %v1778_v35 = vld [vmem:[%s2878_s2 + $0x80] sm:$0xf]  ;;  %v1995_v36 = vld [vmem:[%s2878_s2 + $0x88] sm:$0xf0]  ;;  %v1751_v37 = vor.u32 %v1987_v31, %v1748_v32  ;;  %v1734_v38 = vld [vmem:[%s2878_s2 + $0x30] sm:$0xf] }
  0x22   : > { %680 = vmatpush.bf16.msra.mxu2 %v1803_v29  ;;  %v1985_v39 = vld [vmem:[%s2878_s2 + $0x38] sm:$0xf0]  ;;  %v1984_v40 = vld [vmem:[%s2878_s2 + $0x34] sm:$0xf]  ;;  %v1736_v41 = vld [vmem:[%s2878_s2 + $0x3c] sm:$0xf0]  ;;  %v1779_v44 = vor.u32 %v1995_v36, %v1778_v35 }
  0x23   : > { %s2452_s22 = scalar_select %p472_p10, %s2333_s17, 3  ;;  %v1722_v42 = vld [vmem:[%s2878_s2 + $0x18] sm:$0xf]  ;;  %v1982_v43 = vld [vmem:[%s2878_s2 + $0x20] sm:$0xf0]  ;;  %v1735_v46 = vor.u32 %v1985_v39, %v1734_v38  ;;  %v1739_v48 = vor.u32 %v1984_v40, %v1736_v41  ;;  %vm699_vm0 = vcmask 261120  }
  0x24   : > { %654 = vmatpush.bf16.msra.mxu0 %v1771_v16  ;;  %v1766_v45 = vld [vmem:[%s2878_s2 + $0x68] sm:$0xf]  ;;  %v1992_v47 = vld [vmem:[%s2878_s2 + $0x70] sm:$0xf0]  ;;  %v1981_v49 = vld [vmem:[%s2878_s2 + $0x1c] sm:$0xf]  ;;  %v1723_v52 = vor.u32 %v1982_v43, %v1722_v42 }
  0x25   : > { %668 = vmatpush.bf16.msra.mxu1 %v1775_v17  ;;  %v1724_v50 = vld [vmem:[%s2878_s2 + $0x24] sm:$0xf0]  ;;  %s1977_s24 = sshll.u32 %s2452_s22, 4  ;;  %v1767_v51 = vor.u32 %v1992_v47, %v1766_v45  ;;  %v1754_v53 = vld [vmem:[%s2878_s2 + $0x50] sm:$0xf]  ;;  %s479_s20 = scalar_lea.vmem %s2877_s1, %s2452_s22  ;;  %vm727_vm1 = vcmask 130048  }
  0x26   : > { %681 = vmatpush.bf16.msra.mxu2 %v1791_v33  ;;  %v1989_v54 = vld [vmem:[%s2878_s2 + $0x58] sm:$0xf0]  ;;  %v1727_v55 = vor.u32 %v1981_v49, %v1724_v50  ;;  %v1710_v56 = vld [vmem:[%s2878_s2] sm:$0xf]  ;;  %v1979_v57 = vld [vmem:[%s2878_s2 + $0x8] sm:$0xf0]  ;;  %s476_s16 = scalar_lea.vmem %s2906_s0, %s1977_s24 }
  0x27   : > { %v1978_v58 = vld [vmem:[%s2878_s2 + $0x4] sm:$0xf]  ;;  %v1712_v59 = vld [vmem:[%s2878_s2 + $0xc] sm:$0xf0]  ;;  %v1755_v60 = vor.u32 %v1989_v54, %v1754_v53  ;;  %v1742_v61 = vld [vmem:[%s2878_s2 + $0x38] sm:$0xf]  ;;  %v1711_v62 = vor.u32 %v1979_v57, %v1710_v56 }
  0x28   : > { %655 = vmatpush.bf16.msra.mxu0 %v1759_v22  ;;  %v2497_v63 = vld [vmem:[%s476_s16] sm:$0xff]  ;;  %v2499_v0 = vld [vmem:[%s476_s16 + $0x8] sm:$0xff]  ;;  %v1715_v2 = vor.u32 %v1978_v58, %v1712_v59  ;;  %v1980_v9 = vld [vmem:[%s2878_s2 + $0x10] sm:$0xf0]  ;;  %s2232_s24 = smov 64   ;;  %vm1011_vm2 = vcmask 523264  }
  0x29   : > { %669 = vmatpush.bf16.msra.mxu1 %v1763_v26  ;;  %v1986_v1 = vld [vmem:[%s2878_s2 + $0x40] sm:$0xf0]  ;;  %v483_v3 = vpack.c.bf16 %v2499_v0, %v2497_v63  ;;  %v1730_v5 = vld [vmem:[%s2878_s2 + $0x20] sm:$0xf]  ;;  %v1983_v6 = vld [vmem:[%s2878_s2 + $0x28] sm:$0xf0] }
  0x2a   : > { %682 = vmatpush.bf16.msra.mxu2 %v1779_v44  ;;  %v1743_v4 = vor.u32 %v1986_v1, %v1742_v61  ;;  %v1731_v7 = vor.u32 %v1983_v6, %v1730_v5  ;;  %v1718_v8 = vld [vmem:[%s2878_s2 + $0x8] sm:$0xf]  ;;  %v516_v12 = vld [vmem:[%s2879_s3] sm:$0x7]  ;;  %vm1014_vm3 = vcmask 785408   ;;  %s2187_s22 = scalar_lea.hbm %s2890_s14, 64 }
  0x2b   : > { %v1719_v10 = vor.u32 %v1980_v9, %v1718_v8  ;;  %v519_v14 = vperm.slane %v516_v12, 1  ;;  %v518_v18 = vperm.slane %v516_v12, 0  ;;  %v520_v26 = vperm.slane %v516_v12, 2  ;;  %v694_v33 = vld [vmem:[%s479_s20] sm:$0x1] }
  0x2c   : > { %656 = vmatpush.bf16.msra.mxu0 %v1747_v34  ;;  %v695_v34 = vsub.f32 1.0, %v694_v33 }
  0x2d   : > { %670 = vmatpush.bf16.msra.mxu1 %v1751_v37 }
  0x2e   : > { %683 = vmatpush.bf16.msra.mxu2 %v1767_v51  ;;  %v696_v35 = vmul.f32 10000.0, %v695_v34 }
  0x30   : > { %657 = vmatpush.bf16.msra.mxu0 %v1735_v46  ;;  %v2535_v36 = vperm.slane %v696_v35, 0 }
  0x31   : > { %671 = vmatpush.bf16.msra.mxu1 %v1739_v48 }
  0x32   : > { %684 = vmatpush.bf16.msra.mxu2 %v1755_v60 }
  0x34   : > { %658 = vmatpush.bf16.msra.mxu0 %v1723_v52 }
  0x35   : > { %672 = vmatpush.bf16.msra.mxu1 %v1727_v55 }
  0x36   : > { %685 = vmatpush.bf16.msra.mxu2 %v1743_v4 }
  0x38   : > { %659 = vmatpush.bf16.msra.mxu0 %v1711_v62 }
  0x39   : > { %673 = vmatpush.bf16.msra.mxu1 %v1715_v2 }
  0x3a   : > { %686 = vmatpush.bf16.msra.mxu2 %v1731_v7 }
  0x3b   : > { %660 = vmatmul.bf16.vlgmr.msra.gmra.mxu0 %v483_v3 }
  0x3c   : > { %674 = vmatmul.bf16.vlgmr.msra.gmra.mxu1 %v483_v3 }
  0x3e   : > { %687 = vmatpush.bf16.msra.mxu2 %v1719_v10 }
  0x41   : > { %688 = vmatmul.bf16.vlgmr.msra.gmra.mxu2 %v483_v3 }
  0xb8   : > { %v661_v13 = vpop.f32.mrf.mxu0 }
  0xb9   : > { %v675_v11 = vpop.f32.mrf.mxu1  ;;  %v662_v22 = vadd.f32 %v661_v13, %v518_v18 }
  0xba   : > { %v676_v16 = vadd.f32 %v675_v11, %v519_v14 }
  0xc0   : > { %v663_v20 = vpop.f32.mrf.mxu0 }
  0xc1   : > { %v677_v15 = vpop.f32.mrf.mxu1  ;;  %v664_v23 = vadd.f32 %v663_v20, %v518_v18 }
  0xc2   : > { %v678_v17 = vadd.f32 %v677_v15, %v519_v14 }
  0xc3   : > { %v697_v25 = vpack.c.bf16 %v664_v23, %v662_v22 }
  0xc4   : > { %v698_v19 = vpack.c.bf16 %v678_v17, %v676_v16  ;;  %v689_v24 = vpop.f32.mrf.mxu2 }
  0xc5   : > { %v690_v27 = vadd.f32 %v689_v24, %v520_v26 }
  0xc6   : > { %773 = vrot.lane.b32.xlu2 %v698_v19, %s2231_s29  ;;  %v704_v21 = vsel %vm699_vm0, %v698_v19, 0 }
  0xc7   : > { %713 = vmatpush.bf16.xpose.msra.mxu3 %v704_v21 }
  0xcc   : > { %v691_v28 = vpop.f32.mrf.mxu2 }
  0xcd   : > { %v692_v29 = vadd.f32 %v691_v28, %v520_v26 }
  0xce   : > { %770 = vrot.lane.b32.xlu2 %v697_v25, %s2231_s29  ;;  %1804 = vmatmul.msk.bf16.vlgmr.msra.gmra.mxu3 %vm699_vm0, %v697_v25 }
  0xcf   : > { %v2525_v30 = vpack.c.bf16 %v692_v29, %v690_v27 }
  0xd1   : > { %762 = vmatpush.bf16.msrb.mxu3 %v2525_v30 }
  0xd6   : > { %843 = vrot.lane.b32.xlu2 %v697_v25, %s2232_s24 }
  0xde   : > { %914 = vrot.lane.b32.xlu2 %v697_v25, %s2233_s18 }
 0x120   : > { %v774_v31 = vpop.permute.xlu2 %773 }
 0x121   : > { %v779_v32 = vsel %vm699_vm0, %v774_v31, 0 }
 0x122   : > { %788 = vmatpush.bf16.xpose.msra.mxu3 %v779_v32 }
 0x128   : > { %v771_v55 = vpop.permute.xlu2 %770 }
 0x130   : > { %v844_v58 = vpop.permute.xlu2 %843 }
 0x138   : > { %v915_v10 = vpop.permute.xlu2 %914 }
 0x151   : > { %v715_v37 = vpop.f32.mrf.mxu3 }
 0x152   : > { %v720_v38 = vmul.f32 0.17677669, %v715_v37 }
 0x154   : > { %v725_v39 = vsub.f32 %v720_v38, %v2535_v36 }
 0x156   : > { %v728_v40 = vsel %vm727_vm1, %v725_v39, -inf }
 0x157   : > { %729 = vmax.xlane.f32.xlu0 %v728_v40 }
 0x159   : > { %v717_v41 = vpop.f32.mrf.mxu3 }
 0x15a   : > { %v721_v42 = vmul.f32 0.17677669, %v717_v41 }
 0x15c   : > { %v726_v43 = vsub.f32 %v721_v42, %v2535_v36 }
 0x15e   : > { %v731_v44 = vsel %vm727_vm1, %v726_v43, -inf }
 0x15f   : > { %732 = vmax.xlane.f32.xlu0 %v731_v44 }
 0x173   : > { %845 = vrot.lane.b32.xlu0 %v698_v19, %s2232_s24 }
 0x1ca   : > { %v730_v45 = vpop.xlane.xlu0 %729 }
 0x1cb   : > { %v734_v46 = vsub.f32 %v725_v39, %v730_v45 }
 0x1cd   : > { %v736_v47 = vmul.f32 1.442695, %v734_v46 }
 0x1cf   : > { %2109 = vpow2.f32 %v736_v47 }
 0x1d2   : > { %v733_v48 = vpop.xlane.xlu0 %732 }
 0x1d3   : > { %v735_v49 = vsub.f32 %v726_v43, %v733_v48 }
 0x1d5   : > { %v2110_v50 = vpop.eup %2109  ;;  %v738_v51 = vmul.f32 1.442695, %v735_v49 }
 0x1d6   : > { %v740_v52 = vsel %vm727_vm1, %v2110_v50, 0.0 }
 0x1d7   : > { %2111 = vpow2.f32 %v738_v51  ;;  %741 = vadd.xlane.f32.xlu1 %v740_v52 }
 0x1dd   : > { %v2112_v53 = vpop.eup %2111 }
 0x1de   : > { %v743_v54 = vsel %vm727_vm1, %v2112_v53, 0.0 }
 0x1df   : > { %744 = vadd.xlane.f32.xlu1 %v743_v54 }
 0x1e5   : > { %v846_v56 = vpop.permute.xlu0 %845 }
 0x1e6   : > { %v851_v57 = vsel %vm699_vm0, %v846_v56, 0 }
 0x1e7   : > { %860 = vmatpush.bf16.xpose.msrb.mxu2 %v851_v57 }
 0x1ee   : > { %1808 = vmatmul.msk.bf16.vlgmr.msrb.gmra.mxu2 %vm699_vm0, %v844_v58 }
 0x1f8   : > { %916 = vrot.lane.b32.xlu1 %v698_v19, %s2233_s18 }
 0x24a   : > { %v742_v59 = vpop.xlane.xlu1 %741 }
 0x24b   : > { %2113 = vrcp.f32 %v742_v59 }
 0x251   : > { %v2114_v61 = vpop.eup %2113 }
 0x252   : > { %v745_v60 = vpop.xlane.xlu1 %744  ;;  %v748_v1 = vmul.f32 %v2114_v61, %v2110_v50 }
 0x253   : > { %2115 = vrcp.f32 %v745_v60 }
 0x259   : > { %v2116_v62 = vpop.eup %2115 }
 0x25a   : > { %v749_v2 = vmul.f32 %v2116_v62, %v2112_v53 }
 0x25c   : > { %v750_v3 = vpack.c.bf16 %v749_v2, %v748_v1 }
 0x25e   : > { %1805 = vmatmul.msk.bf16.vlgmr.msrb.gmra.mxu3 %vm727_vm1, %v750_v3 }
 0x26a   : > { %v917_v4 = vpop.permute.xlu1 %916 }
 0x26b   : > { %v922_v5 = vsel %vm699_vm0, %v917_v4, 0 }
 0x26c   : > { %931 = vmatpush.bf16.xpose.msrb.mxu3 %v922_v5 }
 0x26e   : > { %1806 = vmatmul.msk.bf16.vlgmr.msra.gmra.mxu3 %vm699_vm0, %v771_v55 }
 0x271   : > { %v862_v6 = vpop.f32.mrf.mxu2 }
 0x272   : > { %v867_v7 = vmul.f32 0.17677669, %v862_v6 }
 0x274   : > { %v869_v8 = vsub.f32 %v867_v7, %v2535_v36 }
 0x276   : > { %v871_v9 = vsel %vm727_vm1, %v869_v8, -inf }
 0x277   : > { %872 = vmax.xlane.f32.xlu1 %v871_v9 }
 0x279   : > { %v864_v18 = vpop.f32.mrf.mxu2 }
 0x27a   : > { %v868_v21 = vmul.f32 0.17677669, %v864_v18 }
 0x27c   : > { %v870_v26 = vsub.f32 %v868_v21, %v2535_v36 }
 0x27e   : > { %1810 = vmatmul.msk.bf16.vlgmr.msrb.gmra.mxu3 %vm699_vm0, %v915_v10  ;;  %v874_v29 = vsel %vm727_vm1, %v870_v26, -inf }
 0x2e1   : > { %v2553_v11 = vpop.f32.mrf.mxu3 }
 0x2e9   : > { %v2555_v12 = vpop.f32.mrf.mxu3 }
 0x2ea   : > { %v873_v13 = vpop.xlane.xlu1 %872 }
 0x2eb   : > { %v877_v14 = vsub.f32 %v869_v8, %v873_v13 }
 0x2ed   : > { %v879_v15 = vmul.f32 1.442695, %v877_v14 }
 0x2ef   : > { %2117 = vpow2.f32 %v879_v15 }
 0x2f1   : > { %v790_v16 = vpop.f32.mrf.mxu3 }
 0x2f2   : > { %v795_v17 = vmul.f32 0.17677669, %v790_v16 }
 0x2f4   : > { %v797_v19 = vsub.f32 %v795_v17, %v2535_v36 }
 0x2f5   : > { %v2558_v20 = vpop.eup %2117 }
 0x2f6   : > { %v799_v22 = vsel %vm727_vm1, %v797_v19, -inf  ;;  %v883_v23 = vsel %vm727_vm1, %v2558_v20, 0.0 }
 0x2f7   : > { %800 = vmax.xlane.f32.xlu2 %v799_v22  ;;  %884 = vadd.xlane.f32.xlu1 %v883_v23 }
 0x2f9   : > { %v792_v24 = vpop.f32.mrf.mxu3 }
 0x2fa   : > { %v796_v25 = vmul.f32 0.17677669, %v792_v24 }
 0x2fc   : > { %v798_v27 = vsub.f32 %v796_v25, %v2535_v36 }
 0x2fe   : > { %v802_v28 = vsel %vm727_vm1, %v798_v27, -inf }
 0x2ff   : > { %803 = vmax.xlane.f32.xlu0 %v802_v28  ;;  %875 = vmax.xlane.f32.xlu2 %v874_v29  ;;  %v2009_v29 = vld [vmem:[%s2880_s4 + $0x38] sm:$0xff] }
 0x300   : > { %1086 = vmatpush.bf16.msrb.mxu1 %v2009_v29  ;;  %v1896_v29 = vld [vmem:[%s2884_s8 + $0x68] sm:$0xf0] }
 0x301   : > { %v933_v31 = vpop.f32.mrf.mxu3 }
 0x302   : > { %v938_v32 = vmul.f32 0.17677669, %v933_v31 }
 0x304   : > { %v940_v33 = vsub.f32 %v938_v32, %v2535_v36  ;;  %v2007_v32 = vld [vmem:[%s2880_s4 + $0x28] sm:$0xff] }
 0x306   : > { %v942_v34 = vsel %vm727_vm1, %v940_v33, -inf }
 0x307   : > { %943 = vmax.xlane.f32.xlu0 %v942_v34 }
 0x309   : > { %v935_v35 = vpop.f32.mrf.mxu3 }
 0x30a   : > { %v939_v37 = vmul.f32 0.17677669, %v935_v35 }
 0x30c   : > { %v941_v38 = vsub.f32 %v939_v37, %v2535_v36 }
 0x30e   : > { %v945_v39 = vsel %vm727_vm1, %v941_v38, -inf }
 0x30f   : > { %946 = vmax.xlane.f32.xlu2 %v945_v39 }
 0x327   : > { %823 = vrot.lane.b32.xlu2 %v2525_v30, %s2231_s29 }
 0x36a   : > { %v801_v40 = vpop.xlane.xlu2 %800  ;;  %v885_v3 = vpop.xlane.xlu1 %884 }
 0x36b   : > { %v805_v41 = vsub.f32 %v797_v19, %v801_v40 }
 0x36d   : > { %v807_v42 = vmul.f32 1.442695, %v805_v41  ;;  %v2006_v41 = vld [vmem:[%s2880_s4 + $0x20] sm:$0xff] }
 0x36f   : > { %2119 = vpow2.f32 %v807_v42  ;;  %v2005_v42 = vld [vmem:[%s2880_s4 + $0x18] sm:$0xff] }
 0x372   : > { %v876_v43 = vpop.xlane.xlu2 %875  ;;  %v804_v44 = vpop.xlane.xlu0 %803 }
 0x373   : > { %v878_v45 = vsub.f32 %v870_v26, %v876_v43  ;;  %v806_v48 = vsub.f32 %v798_v27, %v804_v44  ;;  %v2004_v43 = vld [vmem:[%s2880_s4 + $0x10] sm:$0xff]  ;;  %v2003_v44 = vld [vmem:[%s2880_s4 + $0x8] sm:$0xff] }
 0x375   : > { %v2120_v46 = vpop.eup %2119  ;;  %v881_v47 = vmul.f32 1.442695, %v878_v45  ;;  %v809_v36 = vmul.f32 1.442695, %v806_v48  ;;  %v2002_v45 = vld [vmem:[%s2880_s4] sm:$0xff] }
 0x376   : > { %v811_v49 = vsel %vm727_vm1, %v2120_v46, 0.0 }
 0x377   : > { %2121 = vpow2.f32 %v881_v47  ;;  %812 = vadd.xlane.f32.xlu1 %v811_v49 }
 0x378   : > { %2123 = vpow2.f32 %v809_v36 }
 0x37a   : > { %v944_v50 = vpop.xlane.xlu0 %943 }
 0x37b   : > { %v948_v51 = vsub.f32 %v940_v33, %v944_v50 }
 0x37d   : > { %v2122_v52 = vpop.eup %2121  ;;  %v950_v53 = vmul.f32 1.442695, %v948_v51 }
 0x37e   : > { %v886_v54 = vsel %vm727_vm1, %v2122_v52, 0.0  ;;  %v2124_v56 = vpop.eup %2123 }
 0x37f   : > { %2125 = vpow2.f32 %v950_v53  ;;  %887 = vadd.xlane.f32.xlu0 %v886_v54  ;;  %v814_v60 = vsel %vm727_vm1, %v2124_v56, 0.0 }
 0x382   : > { %v947_v55 = vpop.xlane.xlu2 %946 }
 0x383   : > { %v949_v57 = vsub.f32 %v941_v38, %v947_v55 }
 0x385   : > { %v2126_v58 = vpop.eup %2125  ;;  %v952_v59 = vmul.f32 1.442695, %v949_v57 }
 0x386   : > { %v954_v61 = vsel %vm727_vm1, %v2126_v58, 0.0 }
 0x387   : > { %2127 = vpow2.f32 %v952_v59  ;;  %815 = vadd.xlane.f32.xlu0 %v814_v60  ;;  %955 = vadd.xlane.f32.xlu1 %v954_v61 }
 0x38a   : > { %v824_v62 = vpop.permute.xlu2 %823 }
 0x38b   : > { %836 = vmatpush.bf16.msrb.mxu0 %v824_v62 }
 0x38d   : > { %v2128_v1 = vpop.eup %2127 }
 0x38e   : > { %v957_v2 = vsel %vm727_vm1, %v2128_v1, 0.0 }
 0x38f   : > { %958 = vadd.xlane.f32.xlu0 %v957_v2 }
 0x3a0   : > { %894 = vrot.lane.b32.xlu1 %v2525_v30, %s2232_s24 }
 0x3a3   : > { %965 = vrot.lane.b32.xlu0 %v2525_v30, %s2233_s18 }
 0x3ea   : > { %v813_v5 = vpop.xlane.xlu1 %812 }
 0x3eb   : > { %2129 = vrcp.f32 %v813_v5 }
 0x3f1   : > { %v2130_v7 = vpop.eup %2129 }
 0x3f2   : > { %v888_v4 = vpop.xlane.xlu0 %887  ;;  %v819_v9 = vmul.f32 %v2130_v7, %v2120_v46 }
 0x3fa   : > { %v816_v6 = vpop.xlane.xlu0 %815  ;;  %v956_v15 = vpop.xlane.xlu1 %955 }
 0x3fb   : > { %2131 = vrcp.f32 %v816_v6 }
 0x3fc   : > { %2133 = vrcp.f32 %v888_v4  ;;  %v2234_v4 = vmov 128.0  }
 0x3fd   : > { %2135 = vrcp.f32 %v885_v3 }
 0x401   : > { %v2132_v8 = vpop.eup %2131 }
 0x402   : > { %v820_v10 = vmul.f32 %v2132_v8, %v2124_v56  ;;  %v959_v14 = vpop.xlane.xlu0 %958  ;;  %v2134_v30 = vpop.eup %2133 }
 0x403   : > { %2137 = vrcp.f32 %v959_v14  ;;  %v2136_v16 = vpop.eup %2135  ;;  %v892_v18 = vmul.f32 %v2134_v30, %v2122_v52 }
 0x404   : > { %v821_v13 = vpack.c.bf16 %v820_v10, %v819_v9  ;;  %2139 = vrcp.f32 %v956_v15  ;;  %v891_v21 = vmul.f32 %v2136_v16, %v2558_v20  ;;  %v2008_v20 = vld [vmem:[%s2880_s4 + $0x30] sm:$0xff] }
 0x405   : > { %1087 = vmatpush.bf16.msrb.mxu1 %v2008_v20  ;;  %2141 = vrcp.f32 %v2234_v4 }
 0x406   : > { %1807 = vmatmul.msk.bf16.vlgmr.msrb.gmra.mxu0 %vm727_vm1, %v821_v13  ;;  %v893_v24 = vpack.c.bf16 %v892_v18, %v891_v21  ;;  %v1902_v18 = vld [vmem:[%s2884_s8 + $0x70] sm:$0xf]  ;;  %v2024_v21 = vld [vmem:[%s2884_s8 + $0x74] sm:$0xf] }
 0x409   : > { %v2138_v17 = vpop.eup %2137  ;;  %1088 = vmatpush.bf16.msrb.mxu1 %v2007_v32  ;;  %v2021_v32 = vld [vmem:[%s2884_s8 + $0x54] sm:$0xf0] }
 0x40a   : > { %v2140_v19 = vpop.eup %2139  ;;  %v963_v23 = vmul.f32 %v2138_v17, %v2128_v1 }
 0x40b   : > { %v962_v25 = vmul.f32 %v2140_v19, %v2126_v58  ;;  %v2142_v5 = vpop.eup %2141  ;;  %v2025_v19 = vld [vmem:[%s2884_s8 + $0x74] sm:$0xf0] }
 0x40c   : > { %v1109_v6 = vmul.f32 128.0, %v2142_v5  ;;  %vm1113_vm4 = vweird.f32 %v2142_v5 }
 0x40d   : > { %v964_v27 = vpack.c.bf16 %v963_v23, %v962_v25  ;;  %1089 = vmatpush.bf16.msrb.mxu1 %v2006_v41  ;;  %v1904_v23 = vld [vmem:[%s2884_s8 + $0x78] sm:$0xf0]  ;;  %v1894_v25 = vld [vmem:[%s2884_s8 + $0x60] sm:$0xf] }
 0x40e   : > { %v1110_v7 = vsub.f32 1.0, %v1109_v6 }
 0x410   : > { %v1111_v8 = vmul.f32 %v2142_v5, %v1110_v7 }
 0x411   : > { %1090 = vmatpush.bf16.msrb.mxu1 %v2005_v42  ;;  %v1880_v42 = vld [vmem:[%s2884_s8 + $0x48] sm:$0xf0] }
 0x412   : > { %v895_v22 = vpop.permute.xlu1 %894  ;;  %v1112_v9 = vadd.f32 %v2142_v5, %v1111_v8 }
 0x413   : > { %907 = vmatpush.bf16.msra.mxu2 %v895_v22  ;;  %v1903_v22 = vor.u32 %v2025_v19, %v1902_v18 }
 0x414   : > { %v2622_v10 = vsel %vm1113_vm4, %v2142_v5, %v1112_v9 }
 0x415   : > { %v966_v26 = vpop.permute.xlu0 %965  ;;  %1091 = vmatpush.bf16.msrb.mxu1 %v2004_v43 }
 0x416   : > { %1809 = vmatmul.msk.bf16.vlgmr.msra.gmra.mxu2 %vm727_vm1, %v893_v24  ;;  %978 = vmatpush.bf16.msra.mxu0 %v966_v26  ;;  %v1907_v24 = vor.u32 %v2024_v21, %v1904_v23  ;;  %v2023_v26 = vld [vmem:[%s2884_s8 + $0x64] sm:$0xf0] }
 0x417   : > { %1264 = vmatpush.bf16.msrb.mxu2 %v1903_v22 }
 0x418   : > { %1278 = vmatpush.bf16.msra.mxu3 %v1907_v24 }
 0x419   : > { %1811 = vmatmul.msk.bf16.vlgmr.msra.gmra.mxu0 %vm727_vm1, %v964_v27  ;;  %1092 = vmatpush.bf16.msrb.mxu1 %v2003_v44  ;;  %v2022_v27 = vld [vmem:[%s2884_s8 + $0x64] sm:$0xf]  ;;  %v1870_v44 = vld [vmem:[%s2884_s8 + $0x30] sm:$0xf] }
 0x41a   : > { %v1899_v20 = vor.u32 %v2022_v27, %v1896_v29 }
 0x41c   : > { %1279 = vmatpush.bf16.msra.mxu3 %v1899_v20  ;;  %v2105_v20 = vld [vmem:[%s2883_s7] ss:$0 sm:$0xff] }
 0x41d   : > { %1093 = vmatpush.bf16.msrb.mxu1 %v2002_v45  ;;  %v2017_v45 = vld [vmem:[%s2884_s8 + $0x34] sm:$0xf0] }
 0x483   : > { %v838_v28 = vpop.f32.mrf.mxu0 }
 0x48b   : > { %v840_v33 = vpop.f32.mrf.mxu0 }
 0x48c   : > { %v2093_v38 = vpack.i.bf16 %v840_v33, %v838_v28  ;;  %v1895_v28 = vor.u32 %v2023_v26, %v1894_v25  ;;  %v2020_v33 = vld [vmem:[%s2884_s8 + $0x54] sm:$0xf]  ;;  %v2104_v25 = vld [vmem:[%s2882_s6] ss:$0 sm:$0xff] }
 0x48e   : > { %1265 = vmatpush.bf16.msrb.mxu2 %v1895_v28 }
 0x496   : > { %v980_v37 = vpop.f32.mrf.mxu0 }
 0x499   : > { %v909_v31 = vpop.f32.mrf.mxu2 }
 0x49e   : > { %v982_v39 = vpop.f32.mrf.mxu0 }
 0x49f   : > { %v2098_v40 = vpack.i.bf16 %v982_v39, %v980_v37  ;;  %v2019_v39 = vld [vmem:[%s2884_s8 + $0x44] sm:$0xf0] }
 0x4a1   : > { %v911_v34 = vpop.f32.mrf.mxu2 }
 0x4a2   : > { %v2088_v35 = vpack.i.bf16 %v911_v34, %v909_v31  ;;  %v1886_v31 = vld [vmem:[%s2884_s8 + $0x50] sm:$0xf] }
 0x4a3   : > { %v1887_v34 = vor.u32 %v2021_v32, %v1886_v31 }
 0x4a4   : > { %2089 = vrot.lane.b32.xlu2 %v2088_v35, %s2232_s24  ;;  %v1888_v35 = vld [vmem:[%s2884_s8 + $0x58] sm:$0xf0]  ;;  %s2042_s24 = sshll.u32 %s2333_s17, 4  ;;  %s1615_s17 = scalar_lea.sflag [#allocation3], %s469_s27 }
 0x4a5   : > { %v1891_v37 = vor.u32 %v2020_v33, %v1888_v35  ;;  %1266 = vmatpush.bf16.msrb.mxu2 %v1887_v34  ;;  %v1178_v34 = vld [vmem:[%s2885_s9] sm:$0x3]  ;;  %v2041_v35 = vld [vmem:[%s2886_s10 + $0x78] sm:$0xff] }
 0x4a6   : > { %1544 = vmatpush.bf16.msra.mxu1 %v2041_v35 }
 0x4a7   : > { %1280 = vmatpush.bf16.msra.mxu3 %v1891_v37  ;;  %v1180_v37 = vperm.slane %v1178_v34, 0 }
 0x4ac   : > { %2094 = vrot.lane.b32.xlu2 %v2093_v38, %s2233_s18  ;;  %v1878_v38 = vld [vmem:[%s2884_s8 + $0x40] sm:$0xf] }
 0x4ad   : > { %v1879_v41 = vor.u32 %v2019_v39, %v1878_v38  ;;  %v1181_v38 = vperm.slane %v1178_v34, 1  ;;  %v2032_v39 = vld [vmem:[%s2886_s10 + $0x30] sm:$0xff] }
 0x4af   : > { %1267 = vmatpush.bf16.msrb.mxu2 %v1879_v41 }
 0x4b4   : > { %2099 = vrot.lane.b32.xlu2 %v2098_v40, %s2231_s29  ;;  %v2018_v40 = vld [vmem:[%s2884_s8 + $0x44] sm:$0xf]  ;;  %s1626_s29 = scalar_lea.hbm %s2890_s14, %s2042_s24 }
 0x4b5   : > { %v1883_v43 = vor.u32 %v2018_v40, %v1880_v42  ;;  %v2040_v40 = vld [vmem:[%s2886_s10 + $0x70] sm:$0xff]  ;;  %s1629_s26 = sshll.u32 %s1626_s29, 4  ;;  %s1630_s26 = int_to_ptr.hbm [resolvable:$true] %s1629_s26 }
 0x4b6   : > { %1545 = vmatpush.bf16.msra.mxu1 %v2040_v40  ;;  %s2181_s28 = sshra.s32 %s1630_s26, 4  ;;  %s2182_s28 = int_to_ptr.hbm [resolvable:$true] %s2181_s28 }
 0x4b7   : > { %1281 = vmatpush.bf16.msra.mxu3 %v1883_v43  ;;  %s2183_s15 = scalar_lea.hbm %s2182_s28, 16  ;;  %p2188_p0 = scmp.lt.s32.totalorder %s2182_s28, %s2890_s14 }
 0x4b8   : > { %p2184_p11 = scmp.ne.s32.totalorder %s2182_s28, %s2183_s15  ;;  %p2189_p1 = scmp.lt.s32.totalorder %s2187_s22, %s2183_s15 }
 0x4ba   : > { %p2185_p12 = pnand %p2184_p11, %p2350_p5  ;;  %p2190_p2 = por %p2189_p1, %p2188_p0 }
 0x4bc   : > { %p2186_p13 = pneg %p2185_p12 }
 0x4be   : > { %p2191_p3 = pnand %p2190_p2, %p2186_p13 }
 0x4fe   : > { %v2090_v46 = vpop.permute.xlu2 %2089 }
 0x4ff   : > { %v2092_v51 = vunpack.i.h.bf16 %v2090_v46  ;;  %v2091_v52 = vunpack.i.l.bf16 %v2090_v46  ;;  %v2016_v46 = vld [vmem:[%s2884_s8 + $0x34] sm:$0xf] }
 0x506   : > { %v2095_v47 = vpop.permute.xlu2 %2094 }
 0x507   : > { %v2097_v48 = vunpack.i.h.bf16 %v2095_v47  ;;  %v2096_v49 = vunpack.i.l.bf16 %v2095_v47  ;;  %v1871_v47 = vor.u32 %v2017_v45, %v1870_v44  ;;  %v2031_v45 = vld [vmem:[%s2886_s10 + $0x28] sm:$0xff] }
 0x509   : > { %v1010_v36 = vsel %vm699_vm0, %v2555_v12, %v2097_v48  ;;  %v1009_v50 = vsel %vm699_vm0, %v2553_v11, %v2096_v49  ;;  %v2103_v12 = vld [vmem:[%s2881_s5] ss:$0 sm:$0xff]  ;;  %v1872_v48 = vld [vmem:[%s2884_s8 + $0x38] sm:$0xf0]  ;;  %1268 = vmatpush.bf16.msrb.mxu2 %v1871_v47 }
 0x50a   : > { %v1012_v56 = vsel %vm1011_vm2, %v1009_v50, %v2091_v52  ;;  %v1013_v57 = vsel %vm1011_vm2, %v1010_v36, %v2092_v51  ;;  %v1875_v49 = vor.u32 %v2016_v46, %v1872_v48  ;;  %v1862_v36 = vld [vmem:[%s2884_s8 + $0x20] sm:$0xf]  ;;  %v2015_v50 = vld [vmem:[%s2884_s8 + $0x24] sm:$0xf0]  ;;  %v2014_v51 = vld [vmem:[%s2884_s8 + $0x24] sm:$0xf] }
 0x50b   : > { %v1863_v52 = vor.u32 %v2015_v50, %v1862_v36  ;;  %v2039_v46 = vld [vmem:[%s2886_s10 + $0x68] sm:$0xff]  ;;  %v2030_v50 = vld [vmem:[%s2886_s10 + $0x20] sm:$0xff] }
 0x50c   : > { %1282 = vmatpush.bf16.msra.mxu3 %v1875_v49  ;;  %1546 = vmatpush.bf16.msra.mxu1 %v2039_v46 }
 0x50d   : > { %1269 = vmatpush.bf16.msrb.mxu2 %v1863_v52 }
 0x50e   : > { %v2100_v53 = vpop.permute.xlu2 %2099 }
 0x50f   : > { %v2102_v54 = vunpack.i.h.bf16 %v2100_v53  ;;  %v2101_v55 = vunpack.i.l.bf16 %v2100_v53  ;;  %v1864_v53 = vld [vmem:[%s2884_s8 + $0x28] sm:$0xf0] }
 0x511   : > { %v1015_v58 = vsel %vm1014_vm3, %v1012_v56, %v2101_v55  ;;  %v1016_v59 = vsel %vm1014_vm3, %v1013_v57, %v2102_v54  ;;  %v1867_v54 = vor.u32 %v2014_v51, %v1864_v53  ;;  %v1854_v55 = vld [vmem:[%s2884_s8 + $0x10] sm:$0xf]  ;;  %v2013_v56 = vld [vmem:[%s2884_s8 + $0x14] sm:$0xf0]  ;;  %v2012_v57 = vld [vmem:[%s2884_s8 + $0x14] sm:$0xf] }
 0x512   : > { %v1017_v60 = vpack.c.bf16 %v1016_v59, %v1015_v58  ;;  %v1855_v58 = vor.u32 %v2013_v56, %v1854_v55  ;;  %v1856_v59 = vld [vmem:[%s2884_s8 + $0x18] sm:$0xf0]  ;;  %v2038_v51 = vld [vmem:[%s2886_s10 + $0x60] sm:$0xff] }
 0x513   : > { %1283 = vmatpush.bf16.msra.mxu3 %v1867_v54  ;;  %1547 = vmatpush.bf16.msra.mxu1 %v2038_v51 }
 0x514   : > { %1094 = vmatmul.bf16.vlgmr.msrb.gmra.mxu1 %v1017_v60  ;;  %v1846_v60 = vld [vmem:[%s2884_s8] sm:$0xf]  ;;  %1270 = vmatpush.bf16.msrb.mxu2 %v1855_v58 }
 0x591   : > { %v1095_v61 = vpop.f32.mrf.mxu1 }
 0x592   : > { %v1096_v62 = vadd.f32 %v2103_v12, %v1095_v61 }
 0x594   : > { %v1100_v11 = vadd.f32 %v1096_v62, %v2497_v63  ;;  %v1859_v62 = vor.u32 %v2012_v57, %v1856_v59 }
 0x596   : > { %1104 = vadd.xlane.f32.xlu0 %v1100_v11  ;;  %1284 = vmatpush.bf16.msra.mxu3 %v1859_v62 }
 0x599   : > { %v1097_v1 = vpop.f32.mrf.mxu1 }
 0x59a   : > { %v1098_v2 = vadd.f32 %v2103_v12, %v1097_v1  ;;  %v2011_v12 = vld [vmem:[%s2884_s8 + $0x4] sm:$0xf0]  ;;  %v1848_v1 = vld [vmem:[%s2884_s8 + $0x8] sm:$0xf0] }
 0x59c   : > { %v1101_v3 = vadd.f32 %v1098_v2, %v2499_v0 }
 0x59e   : > { %1106 = vadd.xlane.f32.xlu1 %v1101_v3 }
 0x609   : > { %v1105_v13 = vpop.xlane.xlu0 %1104 }
 0x60a   : > { %v1115_v14 = vmul.f32 %v2622_v10, %v1105_v13 }
 0x60c   : > { %v2625_v63 = vsub.f32 %v1100_v11, %v1115_v14  ;;  %v2010_v11 = vld [vmem:[%s2884_s8 + $0x4] sm:$0xf] }
 0x60d   : > { %v1851_v4 = vor.u32 %v2010_v11, %v1848_v1  ;;  %v2028_v1 = vld [vmem:[%s2886_s10 + $0x10] sm:$0xff] }
 0x60e   : > { %v1119_v15 = vmul.f32 %v2625_v63, %v2625_v63 }
 0x60f   : > { %1285 = vmatpush.bf16.msra.mxu3 %v1851_v4 }
 0x610   : > { %1121 = vadd.xlane.f32.xlu2 %v1119_v15 }
 0x611   : > { %v1107_v0 = vpop.xlane.xlu1 %1106 }
 0x612   : > { %v1116_v30 = vmul.f32 %v2622_v10, %v1107_v0 }
 0x614   : > { %v2630_v16 = vsub.f32 %v1101_v3, %v1116_v30  ;;  %v1847_v3 = vor.u32 %v2011_v12, %v1846_v60  ;;  %v2029_v60 = vld [vmem:[%s2886_s10 + $0x18] sm:$0xff] }
 0x615   : > { %v2037_v12 = vld [vmem:[%s2886_s10 + $0x58] sm:$0xff] }
 0x616   : > { %v1120_v17 = vmul.f32 %v2630_v16, %v2630_v16  ;;  %1271 = vmatpush.bf16.msrb.mxu2 %v1847_v3  ;;  %1548 = vmatpush.bf16.msra.mxu1 %v2037_v12 }
 0x618   : > { %1123 = vadd.xlane.f32.xlu0 %v1120_v17 }
 0x683   : > { %v1122_v61 = vpop.xlane.xlu2 %1121 }
 0x684   : > { %v1125_v2 = vmul.f32 %v1122_v61, %v2622_v10 }
 0x686   : > { %v1127_v5 = vadd.f32 1e-12, %v1125_v2  ;;  %v2036_v2 = vld [vmem:[%s2886_s10 + $0x50] sm:$0xff] }
 0x687   : > { %1549 = vmatpush.bf16.msra.mxu1 %v2036_v2 }
 0x688   : > { %2143 = vrsqrt.f32 %v1127_v5  ;;  %vm1135_vm6 = vweird.f32 %v1127_v5 }
 0x68b   : > { %v1124_v6 = vpop.xlane.xlu0 %1123 }
 0x68c   : > { %v1126_v7 = vmul.f32 %v1124_v6, %v2622_v10 }
 0x68e   : > { %v2144_v8 = vpop.eup %2143  ;;  %v1128_v9 = vadd.f32 1e-12, %v1126_v7 }
 0x68f   : > { %v1130_v13 = vmul.f32 %v2144_v8, %v1127_v5  ;;  %vm1136_vm5 = vweird.f32 %v2144_v8 }
 0x690   : > { %2145 = vrsqrt.f32 %v1128_v9  ;;  %vm1137_vm7 = vmor %vm1135_vm6, %vm1136_vm5  ;;  %vm1145_vm9 = vweird.f32 %v1128_v9 }
 0x691   : > { %v1131_v14 = vmul.f32 %v2144_v8, %v1130_v13 }
 0x693   : > { %v1132_v15 = vmul.f32 0.5, %v1131_v14 }
 0x695   : > { %v1133_v0 = vsub.f32 1.5, %v1132_v15  ;;  %v2027_v15 = vld [vmem:[%s2886_s10 + $0x8] sm:$0xff] }
 0x696   : > { %v2146_v30 = vpop.eup %2145 }
 0x697   : > { %v1134_v17 = vmul.f32 %v2144_v8, %v1133_v0  ;;  %v1140_v18 = vmul.f32 %v2146_v30, %v1128_v9  ;;  %vm1146_vm8 = vweird.f32 %v2146_v30  ;;  %v2035_v0 = vld [vmem:[%s2886_s10 + $0x48] sm:$0xff] }
 0x698   : > { %vm1147_vm10 = vmor %vm1145_vm9, %vm1146_vm8  ;;  %1550 = vmatpush.bf16.msra.mxu1 %v2035_v0 }
 0x699   : > { %v1141_v19 = vmul.f32 %v2146_v30, %v1140_v18  ;;  %v1138_v21 = vsel %vm1137_vm7, %v2144_v8, %v1134_v17 }
 0x69a   : > { %v1149_v24 = vmul.f32 %v1138_v21, %v2625_v63 }
 0x69b   : > { %v1142_v22 = vmul.f32 0.5, %v1141_v19 }
 0x69c   : > { %v1154_v29 = vmul.f32 %v2104_v25, %v1149_v24  ;;  %v2026_v24 = vld [vmem:[%s2886_s10] sm:$0xff] }
 0x69d   : > { %v1143_v23 = vsub.f32 1.5, %v1142_v22 }
 0x69e   : > { %v2740_v32 = vadd.f32 %v2105_v20, %v1154_v29 }
 0x69f   : > { %v1144_v26 = vmul.f32 %v2146_v30, %v1143_v23 }
 0x6a1   : > { %v1148_v27 = vsel %vm1147_vm10, %v2146_v30, %v1144_v26 }
 0x6a2   : > { %v1150_v28 = vmul.f32 %v1148_v27, %v2630_v16  ;;  %v2033_v16 = vld [vmem:[%s2886_s10 + $0x38] sm:$0xff] }
 0x6a3   : > { %1530 = vmatpush.bf16.msrb.mxu0 %v2033_v16 }
 0x6a4   : > { %v1155_v31 = vmul.f32 %v2104_v25, %v1150_v28  ;;  %v2034_v25 = vld [vmem:[%s2886_s10 + $0x40] sm:$0xff] }
 0x6a5   : > { %1551 = vmatpush.bf16.msra.mxu1 %v2034_v25 }
 0x6a6   : > { %v2742_v33 = vadd.f32 %v2105_v20, %v1155_v31 }
 0x6a7   : > { %1531 = vmatpush.bf16.msrb.mxu0 %v2032_v39 }
 0x6a8   : > { %v1161_v63 = vpack.c.bf16 %v2742_v33, %v2740_v32 }
 0x6aa   : > { %1272 = vmatmul.bf16.vlgmr.msrb.gmra.mxu2 %v1161_v63  ;;  %1286 = vmatmul.bf16.vlgmr.msra.gmra.mxu3 %v1161_v63 }
 0x6ab   : > { %1532 = vmatpush.bf16.msrb.mxu0 %v2031_v45 }
 0x6af   : > { %1533 = vmatpush.bf16.msrb.mxu0 %v2030_v50 }
 0x6b3   : > { %1534 = vmatpush.bf16.msrb.mxu0 %v2029_v60 }
 0x6b7   : > { %1535 = vmatpush.bf16.msrb.mxu0 %v2028_v1 }
 0x6bb   : > { %1536 = vmatpush.bf16.msrb.mxu0 %v2027_v15 }
 0x6bf   : > { %1537 = vmatpush.bf16.msrb.mxu0 %v2026_v24 }
 0x72d   : > { %v1273_v41 = vpop.f32.mrf.mxu2  ;;  %v1287_v42 = vpop.f32.mrf.mxu3 }
 0x72e   : > { %v2761_v43 = vadd.f32 %v1273_v41, %v1180_v37  ;;  %v2763_v44 = vadd.f32 %v1287_v42, %v1181_v38 }
 0x730   : > { %v2772_v47 = vmul.f32 0.70710677, %v2761_v43  ;;  %v2775_v48 = vmul.f32 0.70710677, %v2763_v44 }
 0x732   : > { %v1300_v49 = vand.u32 2147483647, %v2772_v47  ;;  %v1301_v36 = vand.u32 2147483647, %v2775_v48  ;;  %vm1376_vm11 = vcmp.ge.f32.partialorder %v2772_v47, 0.0  ;;  %vm1377_vm12 = vcmp.ge.f32.partialorder %v2775_v48, 0.0 }
 0x733   : > { %v1293_v48 = vmul.f32 0.5, %v2763_v44 }
 0x734   : > { %v1304_v52 = vmul.f32 0.3275911, %v1300_v49  ;;  %v1305_v53 = vmul.f32 0.3275911, %v1301_v36  ;;  %v1352_v6 = vsub.f32 0.0, %v1300_v49  ;;  %v1353_v13 = vsub.f32 0.0, %v1301_v36 }
 0x735   : > { %v1275_v54 = vpop.f32.mrf.mxu2  ;;  %v1289_v55 = vpop.f32.mrf.mxu3 }
 0x736   : > { %v1308_v56 = vadd.f32 1.0, %v1304_v52  ;;  %v1309_v57 = vadd.f32 1.0, %v1305_v53  ;;  %v2785_v58 = vadd.f32 %v1275_v54, %v1180_v37  ;;  %v2787_v59 = vadd.f32 %v1289_v55, %v1181_v38 }
 0x737   : > { %v1356_v19 = vmul.f32 %v1352_v6, %v1300_v49  ;;  %v1357_v23 = vmul.f32 %v1353_v13, %v1301_v36 }
 0x738   : > { %2147 = vrcp.f32 %v1308_v56  ;;  %v2796_v61 = vmul.f32 0.70710677, %v2785_v58  ;;  %v2799_v62 = vmul.f32 0.70710677, %v2787_v59  ;;  %v1294_v47 = vmul.f32 0.5, %v2785_v58 }
 0x739   : > { %2149 = vrcp.f32 %v1309_v57  ;;  %v1360_v28 = vmul.f32 1.442695, %v1356_v19  ;;  %v1362_v63 = vmul.f32 1.442695, %v1357_v23 }
 0x73a   : > { %v1302_v11 = vand.u32 2147483647, %v2796_v61  ;;  %v1303_v3 = vand.u32 2147483647, %v2799_v62  ;;  %vm1378_vm13 = vcmp.ge.f32.partialorder %v2796_v61, 0.0  ;;  %vm1379_vm14 = vcmp.ge.f32.partialorder %v2799_v62, 0.0 }
 0x73c   : > { %v1306_v4 = vmul.f32 0.3275911, %v1302_v11  ;;  %v1307_v7 = vmul.f32 0.3275911, %v1303_v3  ;;  %v1354_v34 = vsub.f32 0.0, %v1302_v11  ;;  %v1355_v38 = vsub.f32 0.0, %v1303_v3 }
 0x73e   : > { %v2148_v5 = vpop.eup %2147  ;;  %v1310_v14 = vadd.f32 1.0, %v1306_v4  ;;  %v1311_v17 = vadd.f32 1.0, %v1307_v7  ;;  %v1358_v46 = vmul.f32 %v1354_v34, %v1302_v11  ;;  %v1359_v51 = vmul.f32 %v1355_v38, %v1303_v3 }
 0x73f   : > { %v2150_v8 = vpop.eup %2149  ;;  %v1316_v9 = vmul.f32 1.0614054, %v2148_v5 }
 0x740   : > { %v1317_v30 = vmul.f32 1.0614054, %v2150_v8  ;;  %2151 = vrcp.f32 %v1310_v14  ;;  %v1364_v57 = vmul.f32 1.442695, %v1358_v46  ;;  %v1366_v4 = vmul.f32 1.442695, %v1359_v51 }
 0x741   : > { %v1320_v18 = vadd.f32 -1.4531521, %v1316_v9  ;;  %2153 = vrcp.f32 %v1311_v17 }
 0x742   : > { %v1321_v21 = vadd.f32 -1.4531521, %v1317_v30  ;;  %2155 = vpow2.f32 %v1360_v28 }
 0x743   : > { %v1324_v22 = vmul.f32 %v2148_v5, %v1320_v18  ;;  %2157 = vpow2.f32 %v1362_v63 }
 0x744   : > { %v1325_v26 = vmul.f32 %v2150_v8, %v1321_v21  ;;  %2159 = vpow2.f32 %v1364_v57 }
 0x745   : > { %v1328_v27 = vadd.f32 1.4214138, %v1324_v22  ;;  %2161 = vpow2.f32 %v1366_v4 }
 0x746   : > { %v1329_v29 = vadd.f32 1.4214138, %v1325_v26  ;;  %v2152_v20 = vpop.eup %2151 }
 0x747   : > { %v1332_v31 = vmul.f32 %v2148_v5, %v1328_v27  ;;  %v2154_v16 = vpop.eup %2153  ;;  %v1318_v37 = vmul.f32 1.0614054, %v2152_v20 }
 0x748   : > { %v1333_v35 = vmul.f32 %v2150_v8, %v1329_v29  ;;  %v1319_v40 = vmul.f32 1.0614054, %v2154_v16  ;;  %v2156_v12 = vpop.eup %2155 }
 0x749   : > { %v1336_v39 = vadd.f32 -0.28449672, %v1332_v31  ;;  %v1322_v42 = vadd.f32 -1.4531521, %v1318_v37  ;;  %v2158_v6 = vpop.eup %2157 }
 0x74a   : > { %v1337_v41 = vadd.f32 -0.28449672, %v1333_v35  ;;  %v1323_v49 = vadd.f32 -1.4531521, %v1319_v40  ;;  %v2160_v21 = vpop.eup %2159 }
 0x74b   : > { %v1340_v45 = vmul.f32 %v2148_v5, %v1336_v39  ;;  %v1326_v50 = vmul.f32 %v2152_v20, %v1322_v42  ;;  %v2162_v23 = vpop.eup %2161  ;;  %v1295_v39 = vmul.f32 0.5, %v2787_v59 }
 0x74c   : > { %v1341_v36 = vmul.f32 %v2150_v8, %v1337_v41  ;;  %v1327_v53 = vmul.f32 %v2154_v16, %v1323_v49 }
 0x74d   : > { %v1344_v52 = vadd.f32 0.2548296, %v1340_v45  ;;  %v1330_v55 = vadd.f32 1.4214138, %v1326_v50 }
 0x74e   : > { %v1345_v54 = vadd.f32 0.2548296, %v1341_v36  ;;  %v1331_v60 = vadd.f32 1.4214138, %v1327_v53 }
 0x74f   : > { %v1348_v56 = vmul.f32 %v2148_v5, %v1344_v52  ;;  %v1334_v2 = vmul.f32 %v2152_v20, %v1330_v55 }
 0x750   : > { %v1349_v1 = vmul.f32 %v2150_v8, %v1345_v54  ;;  %v1335_v9 = vmul.f32 %v2154_v16, %v1331_v60 }
 0x751   : > { %v1368_v7 = vmul.f32 %v2156_v12, %v1348_v56  ;;  %v1338_v11 = vadd.f32 -0.28449672, %v1334_v2 }
 0x752   : > { %v1369_v13 = vmul.f32 %v2158_v6, %v1349_v1  ;;  %v1339_v14 = vadd.f32 -0.28449672, %v1335_v9 }
 0x753   : > { %v1372_v15 = vsub.f32 1.0, %v1368_v7  ;;  %v1342_v3 = vmul.f32 %v2152_v20, %v1338_v11 }
 0x754   : > { %v1373_v0 = vsub.f32 1.0, %v1369_v13  ;;  %v1343_v30 = vmul.f32 %v2154_v16, %v1339_v14 }
 0x755   : > { %v1346_v17 = vadd.f32 0.2548296, %v1342_v3  ;;  %v1380_v18 = vsub.f32 0.0, %v1372_v15 }
 0x756   : > { %v1347_v5 = vadd.f32 0.2548296, %v1343_v30  ;;  %v1381_v8 = vsub.f32 0.0, %v1373_v0 }
 0x757   : > { %v1350_v19 = vmul.f32 %v2152_v20, %v1346_v17  ;;  %v1384_v26 = vsel %vm1376_vm11, %v1372_v15, %v1380_v18  ;;  %v2107_v18 = vld [vmem:[%s2888_s12] ss:$0 sm:$0xff] }
 0x758   : > { %v1351_v22 = vmul.f32 %v2154_v16, %v1347_v5  ;;  %v1385_v28 = vsel %vm1377_vm12, %v1373_v0, %v1381_v8  ;;  %v1388_v63 = vadd.f32 1.0, %v1384_v26  ;;  %v1292_v16 = vmul.f32 0.5, %v2761_v43  ;;  %v2106_v43 = vld [vmem:[%s2887_s11] ss:$0 sm:$0xff] }
 0x759   : > { %v1370_v24 = vmul.f32 %v2160_v21, %v1350_v19  ;;  %v1389_v20 = vadd.f32 1.0, %v1385_v28  ;;  %v2108_v8 = vld [vmem:[%s2889_s13] ss:$0 sm:$0xff] }
 0x75a   : > { %v1371_v25 = vmul.f32 %v2162_v23, %v1351_v22  ;;  %v1392_v41 = vmul.f32 %v1388_v63, %v1292_v16 }
 0x75b   : > { %v1374_v27 = vsub.f32 1.0, %v1370_v24  ;;  %v1393_v45 = vmul.f32 %v1389_v20, %v1293_v48 }
 0x75c   : > { %v1375_v29 = vsub.f32 1.0, %v1371_v25 }
 0x75d   : > { %v1382_v31 = vsub.f32 0.0, %v1374_v27 }
 0x75e   : > { %v1383_v34 = vsub.f32 0.0, %v1375_v29 }
 0x75f   : > { %v1386_v35 = vsel %vm1378_vm13, %v1374_v27, %v1382_v31 }
 0x760   : > { %v1390_v37 = vadd.f32 1.0, %v1386_v35  ;;  %v1387_v38 = vsel %vm1379_vm14, %v1375_v29, %v1383_v34 }
 0x761   : > { %v1391_v40 = vadd.f32 1.0, %v1387_v38 }
 0x762   : > { %v1394_v42 = vmul.f32 %v1390_v37, %v1294_v47 }
 0x763   : > { %v1395_v61 = vmul.f32 %v1391_v40, %v1295_v39 }
 0x764   : > { %v1396_v46 = vpack.c.bf16 %v1394_v42, %v1392_v41 }
 0x765   : > { %v1397_v49 = vpack.c.bf16 %v1395_v61, %v1393_v45 }
 0x766   : > { %1538 = vmatmul.bf16.vlgmr.msrb.gmra.mxu0 %v1396_v46 }
 0x767   : > { %1552 = vmatmul.bf16.vlgmr.msra.gmra.mxu1 %v1397_v49 }
 0x7e3   : > { %v1539_v58 = vpop.f32.mrf.mxu0 }
 0x7e4   : > { %v1540_v62 = vadd.f32 %v2106_v43, %v1539_v58  ;;  %v1553_v36 = vpop.f32.mrf.mxu1 }
 0x7e6   : > { %v1554_v50 = vadd.f32 %v1553_v36, %v1540_v62 }
 0x7e8   : > { %v1558_v44 = vadd.f32 %v1554_v50, %v2740_v32 }
 0x7ea   : > { %1562 = vadd.xlane.f32.xlu1 %v1558_v44 }
 0x7eb   : > { %v1541_v59 = vpop.f32.mrf.mxu0 }
 0x7ec   : > { %v1542_v51 = vadd.f32 %v2106_v43, %v1541_v59  ;;  %v1555_v52 = vpop.f32.mrf.mxu1 }
 0x7ee   : > { %v1556_v53 = vadd.f32 %v1555_v52, %v1542_v51 }
 0x7f0   : > { %v1559_v54 = vadd.f32 %v1556_v53, %v2742_v33 }
 0x7f2   : > { %1564 = vadd.xlane.f32.xlu2 %v1559_v54 }
 0x85d   : > { %v1563_v55 = vpop.xlane.xlu1 %1562 }
 0x85e   : > { %v1566_v56 = vmul.f32 %v1563_v55, %v2622_v10 }
 0x860   : > { %v1568_v57 = vsub.f32 %v1558_v44, %v1566_v56 }
 0x862   : > { %v1570_v60 = vmul.f32 %v1568_v57, %v1568_v57 }
 0x864   : > { %1572 = vadd.xlane.f32.xlu0 %v1570_v60 }
 0x865   : > { %v1565_v12 = vpop.xlane.xlu2 %1564 }
 0x866   : > { %v1567_v1 = vmul.f32 %v1565_v12, %v2622_v10 }
 0x868   : > { %v1569_v2 = vsub.f32 %v1559_v54, %v1567_v1 }
 0x86a   : > { %v1571_v4 = vmul.f32 %v1569_v2, %v1569_v2 }
 0x86c   : > { %1574 = vadd.xlane.f32.xlu1 %v1571_v4 }
 0x8d7   : > { %v1573_v32 = vpop.xlane.xlu0 %1572 }
 0x8d8   : > { %v1576_v6 = vmul.f32 %v1573_v32, %v2622_v10 }
 0x8da   : > { %v1578_v7 = vadd.f32 1e-12, %v1576_v6 }
 0x8dc   : > { %2163 = vrsqrt.f32 %v1578_v7  ;;  %vm1586_vm0 = vweird.f32 %v1578_v7 }
 0x8df   : > { %v1575_v33 = vpop.xlane.xlu1 %1574 }
 0x8e0   : > { %v1577_v9 = vmul.f32 %v1575_v33, %v2622_v10 }
 0x8e2   : > { %v2164_v13 = vpop.eup %2163  ;;  %v1579_v11 = vadd.f32 1e-12, %v1577_v9 }
 0x8e3   : > { %v1581_v14 = vmul.f32 %v2164_v13, %v1578_v7  ;;  %vm1587_vm15 = vweird.f32 %v2164_v13 }
 0x8e4   : > { %2165 = vrsqrt.f32 %v1579_v11  ;;  %vm1588_vm1 = vmor %vm1586_vm0, %vm1587_vm15  ;;  %vm1596_vm3 = vweird.f32 %v1579_v11 }
 0x8e5   : > { %v1582_v15 = vmul.f32 %v2164_v13, %v1581_v14 }
 0x8e7   : > { %v1583_v3 = vmul.f32 0.5, %v1582_v15 }
 0x8e9   : > { %v1584_v0 = vsub.f32 1.5, %v1583_v3 }
 0x8ea   : > { %v2166_v30 = vpop.eup %2165 }
 0x8eb   : > { %v1585_v17 = vmul.f32 %v2164_v13, %v1584_v0  ;;  %v1591_v5 = vmul.f32 %v2166_v30, %v1579_v11  ;;  %vm1597_vm2 = vweird.f32 %v2166_v30 }
 0x8ec   : > { %vm1598_vm4 = vmor %vm1596_vm3, %vm1597_vm2 }
 0x8ed   : > { %v1589_v10 = vsel %vm1588_vm1, %v2164_v13, %v1585_v17  ;;  %v1592_v19 = vmul.f32 %v2166_v30, %v1591_v5 }
 0x8ee   : > { %v1600_v21 = vmul.f32 %v1589_v10, %v1568_v57 }
 0x8ef   : > { %v1593_v22 = vmul.f32 0.5, %v1592_v19 }
 0x8f0   : > { %v1605_v23 = vmul.f32 %v2107_v18, %v1600_v21 }
 0x8f1   : > { %v1594_v24 = vsub.f32 1.5, %v1593_v22 }
 0x8f2   : > { %v1610_v25 = vadd.f32 %v2108_v8, %v1605_v23 }
 0x8f3   : > { %v1595_v26 = vmul.f32 %v2166_v30, %v1594_v24 }
 0x8f4   : > { %1612 = vst [vmem:[%s471_s21] sm:$0xff] %v1610_v25 }
 0x8f5   : > { %v1599_v27 = vsel %vm1598_vm4, %v2166_v30, %v1595_v26 }
 0x8f6   : > { %v1601_v28 = vmul.f32 %v1599_v27, %v1569_v2 }
 0x8f8   : > { %v1606_v29 = vmul.f32 %v2107_v18, %v1601_v28 }
 0x8fa   : > { %v1611_v31 = vadd.f32 %v2108_v8, %v1606_v29 }
 0x8fc   : > { %1613 = vst [vmem:[%s471_s21 + $0x8] sm:$0xff] %v1611_v31 }
 0x8fd   : > { %2194 = shalt.err (!%p2191_p3)
}
 0x8fe   : > { %s2235_s27 = smov 128   ;;  %s2236_s16 = smov 8  }
 0x8ff   : > { %2043 = dma.vmem_to_hbm [thread:$0]  (%p2350_p5), %s1628_s25, 256, %s1630_s26, %s1615_s17, %s2235_s27, %s2235_s27, %s2236_s16  }
 0x900 PF: > { %s2907_s29 = sld [smem:[#allocation7_spill]] }
 0x901   : > { %s2908_s21 = sld [smem:[#allocation5_spill]] }
 0x906   : > { %p2049_p4 = scmp.ge.s32.totalorder %s2907_s29, 2 }
 0x907   : > { %s1644_s19 = sand.u32 1, %s2908_s21  }
 0x908   : > { %p2046_p7 = pnand %p2049_p4, %p2354_p6  ;;  %s1645_s20 = scalar_lea.sflag [#allocation3], %s1644_s19 }
 0x90a   : > { %p2047_p8 = pneg %p2046_p7 }
 0x90c   : > { %2212 = dma.done.wait (%p2047_p8), %s1645_s20, 256  }
 0x90d   : > { %2214 = vsyncadd (%p2047_p8), %s1645_s20, 4294967040  ;;  %s2910_s16 = sld [smem:[#allocation8_spill]]  ;;  %s2913_s29 = smov %s2221_s30 }
 0x90e   : > { %s2911_s28 = sld [smem:[#allocation6_spill]] }
 0x90f   : > { %s2912_s15 = sld [smem:[#allocation9_spill]] }
 0x913   : > { %p24_p9 = scmp.ge.s32.totalorder %s2910_s16, 6  }
 0x914   : > { %s2914_s30 = smov %s2911_s28 }
 0x915   :  { %26 = sbr.rel (!%p24_p9) target bundleno = 5 (0x5), region = 114 }
 0x91a   :  { %1651 = vsyncpa [#allocation3], 1 }
 0x91b   :  { %1653 = vsyncpa [#allocation3 + $0x1], 1 }

</bundles_post_ra>
